<compile_context>
chip_gen: v7x
topology: tpu7x:2x2x1
jax: 0.10.0
libtpu: 0.0.40
codegen_flags: <defaults>
</compile_context>

<pallas_src>
import jax
import jax.numpy as jnp
from jax.experimental import pallas as pl
from jax.experimental.pallas import tpu as pltpu


def _gru_kernel(gi_ref, h0_ref, whh_ref, bhn_ref, out_ref, hn_ref, h_scratch):
    # gi_ref  : (T_CHUNK, 3, B, H) f32  precomputed input projection (gates r,z,n)
    # h0_ref  : (B, H)                  initial hidden
    # whh_ref : (3, H, H)  bf16         per-gate W_hh^T (h @ whh[g] == h @ W_g.T)
    # bhn_ref : (1, H)     f32          b_hh for the n gate (must stay inside r*)
    # out_ref : (T_CHUNK, B, H)         per-chunk output block
    # hn_ref  : (B, H)                  final hidden (resident output block)
    # h_scratch: VMEM (B, H) f32        hidden state carried across chunks
    c = pl.program_id(0)

    @pl.when(c == 0)
    def _():
        h_scratch[...] = h0_ref[...].astype(jnp.float32)

    # Hoist constant loads out of the unrolled time loop.
    w_r = whh_ref[0]
    w_z = whh_ref[1]
    w_n = whh_ref[2]
    b_n = bhn_ref[...]                      # (1, H) f32

    h = h_scratch[...]                      # (B, H) f32
    t_chunk = out_ref.shape[0]              # static
    for t in range(t_chunk):                # static unroll over the time chunk
        h_mm = h.astype(w_r.dtype)          # bf16 operand for the MXU
        gh_r = jnp.dot(h_mm, w_r, preferred_element_type=jnp.float32)
        gh_z = jnp.dot(h_mm, w_z, preferred_element_type=jnp.float32)
        gh_n = jnp.dot(h_mm, w_n, preferred_element_type=jnp.float32)
        r = jax.nn.sigmoid(gi_ref[t, 0] + gh_r)
        z = jax.nn.sigmoid(gi_ref[t, 1] + gh_z)
        n = jnp.tanh(gi_ref[t, 2] + r * (gh_n + b_n))
        h = (1.0 - z) * n + z * h
        out_ref[t] = h.astype(out_ref.dtype)

    h_scratch[...] = h

    @pl.when(c == pl.num_programs(0) - 1)
    def _():
        hn_ref[...] = h.astype(hn_ref.dtype)


def gru_forward_pallas(x_btI, hidden_1bh, w_ih, w_hh, b_ih, b_hh,
                       *, t_chunk=None, matmul_dtype=jnp.bfloat16):
    """PyTorch-style GRU forward.

    x_btI      : (B, T, I)  batch_first input
    hidden_1bh : (1, B, H)  initial hidden
    w_ih       : (3H, I), w_hh : (3H, H), b_ih/b_hh : (3H,)  (gate order r,z,n)
    returns (output (B, T, H), hidden (1, B, H))
    """
    B, T, I = x_btI.shape
    H = hidden_1bh.shape[-1]
    dtype = x_btI.dtype

    if t_chunk is None:
        if T <= 16:
            t_chunk = T
        else:
            t_chunk = next(c for c in (16, 8, 4, 2, 1) if T % c == 0)
    assert T % t_chunk == 0, "T must be divisible by t_chunk"

    # ---- wrapper-side (XLA) preprocessing -------------------------------
    # Per-gate weight views (pure reshapes).
    w_ih_g = w_ih.reshape(3, H, I)                         # (3, H, I)
    w_hh_g = w_hh.reshape(3, H, H)                         # (3, H, H)
    whh_t = jnp.transpose(w_hh_g, (0, 2, 1)).astype(matmul_dtype)  # (3, H, H), h@whh_t[g]

    # Hoisted input projection for ALL timesteps as one big MXU matmul,
    # produced directly in the kernel layout (T, 3, B, H).
    gi = jnp.einsum('bti,ghi->tgbh',
                    x_btI.astype(matmul_dtype),
                    w_ih_g.astype(matmul_dtype),
                    preferred_element_type=jnp.float32)    # (T, 3, B, H) f32

    # Fold b_ih (all gates) + b_hh for the r,z gates into gi (order-invariant);
    # only b_hh_n must remain inside the recurrence (inside the r* term).
    b_ih_g = b_ih.reshape(3, H).astype(jnp.float32)
    b_hh_g = b_hh.reshape(3, H).astype(jnp.float32)
    fold = b_ih_g + jnp.concatenate(
        [b_hh_g[:2], jnp.zeros((1, H), jnp.float32)], axis=0)
    gi = gi + fold[None, :, None, :]                       # (T, 3, B, H)
    b_hh_n = b_hh_g[2:3]                                   # (1, H)

    h0 = hidden_1bh[0]                                     # (B, H)

    out_tbh, h_n = pl.pallas_call(
        _gru_kernel,
        out_shape=(
            jax.ShapeDtypeStruct((T, B, H), dtype),
            jax.ShapeDtypeStruct((B, H), dtype),
        ),
        grid_spec=pltpu.PrefetchScalarGridSpec(
            num_scalar_prefetch=0,
            grid=(T // t_chunk,),
            in_specs=[
                pl.BlockSpec((t_chunk, 3, B, H), lambda c: (c, 0, 0, 0)),  # gi chunk
                pl.BlockSpec((B, H), lambda c: (0, 0)),                    # h0
                pl.BlockSpec((3, H, H), lambda c: (0, 0, 0)),              # W_hh^T per gate
                pl.BlockSpec((1, H), lambda c: (0, 0)),                    # b_hh (n gate)
            ],
            out_specs=[
                pl.BlockSpec((t_chunk, B, H), lambda c: (c, 0, 0)),        # output chunk
                pl.BlockSpec((B, H), lambda c: (0, 0)),                    # final hidden
            ],
            scratch_shapes=[pltpu.VMEM((B, H), jnp.float32)],
        ),
        compiler_params=pltpu.CompilerParams(
            dimension_semantics=("arbitrary",),  # time chunks are a sequential recurrence
        ),
    )(gi, h0, whh_t, b_hh_n)

    # One output-side transpose kept to honor batch_first=True semantics.
    output = jnp.transpose(out_tbh, (1, 0, 2))             # (B, T, H)
    hidden = h_n[None, :, :]                               # (1, B, H)
    return output, hidden


def gru_forward_ref(x_btI, hidden_1bh, w_ih, w_hh, b_ih, b_hh, matmul_dtype=None):
    """Pure-JAX reference matching torch.nn.GRU semantics.

    If matmul_dtype is given, the matmul operands are cast to that dtype
    (mirroring the kernel's bf16 MXU path) while accumulating in f32.
    """
    H = hidden_1bh.shape[-1]
    h0 = hidden_1bh[0].astype(jnp.float32)
    x_tbi = jnp.transpose(x_btI, (1, 0, 2)).astype(jnp.float32)

    wih = w_ih.astype(matmul_dtype) if matmul_dtype is not None else w_ih.astype(jnp.float32)
    whh = w_hh.astype(matmul_dtype) if matmul_dtype is not None else w_hh.astype(jnp.float32)
    bih = b_ih.astype(jnp.float32)
    bhh = b_hh.astype(jnp.float32)

    def step(h, x_t):
        xm = x_t.astype(matmul_dtype) if matmul_dtype is not None else x_t
        hm = h.astype(matmul_dtype) if matmul_dtype is not None else h
        gi = jnp.dot(xm, wih.T, preferred_element_type=jnp.float32) + bih
        gh = jnp.dot(hm, whh.T, preferred_element_type=jnp.float32) + bhh
        i_r, i_z, i_n = gi[:, :H], gi[:, H:2 * H], gi[:, 2 * H:]
        h_r, h_z, h_n = gh[:, :H], gh[:, H:2 * H], gh[:, 2 * H:]
        r = jax.nn.sigmoid(i_r + h_r)
        z = jax.nn.sigmoid(i_z + h_z)
        n = jnp.tanh(i_n + r * h_n)
        h_new = (1.0 - z) * n + z * h
        return h_new, h_new

    h_last, ys = jax.lax.scan(step, h0, x_tbi)
    return (jnp.transpose(ys, (1, 0, 2)).astype(x_btI.dtype),
            h_last[None].astype(x_btI.dtype))


class QuestionDecoderRNNPallas:
    """JAX/Pallas counterpart of the PyTorch QuestionDecoderRNN module."""

    def __init__(self, input_size, hidden_size, key):
        self.hidden_size = hidden_size
        k = 1.0 / jnp.sqrt(hidden_size)
        ks = jax.random.split(key, 4)
        # Deterministic init mirroring nn.GRU's uniform(-1/sqrt(H), 1/sqrt(H)).
        self.w_ih = jax.random.uniform(ks[0], (3 * hidden_size, input_size),
                                       jnp.float32, -k, k)
        self.w_hh = jax.random.uniform(ks[1], (3 * hidden_size, hidden_size),
                                       jnp.float32, -k, k)
        self.b_ih = jax.random.uniform(ks[2], (3 * hidden_size,), jnp.float32, -k, k)
        self.b_hh = jax.random.uniform(ks[3], (3 * hidden_size,), jnp.float32, -k, k)
        self.hiddenState = None

    def forward(self, x, hidden):
        output, hidden = gru_forward_pallas(x, hidden, self.w_ih, self.w_hh,
                                            self.b_ih, self.b_hh)
        self.hiddenState = hidden
        return output, hidden

    def initHidden(self, batch=1):
        return jnp.zeros((1, batch, self.hidden_size), jnp.float32)


if __name__ == "__main__":
    key = jax.random.PRNGKey(0)
    k_param, k_x, k_h = jax.random.split(key, 3)

    B, T, I, H = 2, 8, 32, 32  # small shapes: batch, seq, input_size, hidden_size
    module = QuestionDecoderRNNPallas(I, H, k_param)

    x = jax.random.normal(k_x, (B, T, I), jnp.float32)
    h0 = jax.random.normal(k_h, (1, B, H), jnp.float32)

    out, h_n = module.forward(x, h0)
    out = jax.block_until_ready(out)
    h_n = jax.block_until_ready(h_n)
    assert out.shape == (B, T, H) and h_n.shape == (1, B, H)

    # Tight check vs a reference that mirrors the kernel's bf16 matmul operands.
    out_ref_bf, h_ref_bf = gru_forward_ref(x, h0, module.w_ih, module.w_hh,
                                           module.b_ih, module.b_hh,
                                           matmul_dtype=jnp.bfloat16)
    assert jnp.allclose(out, out_ref_bf, atol=1e-4, rtol=1e-4)
    assert jnp.allclose(h_n, h_ref_bf, atol=1e-4, rtol=1e-4)

    # Loose sanity check vs the full-f32 torch.nn.GRU-semantics reference
    # (differences are only due to the intentional bf16 MXU operands).
    out_ref_f32, h_ref_f32 = gru_forward_ref(x, h0, module.w_ih, module.w_hh,
                                             module.b_ih, module.b_hh)
    assert jnp.allclose(out, out_ref_f32, atol=5e-2, rtol=5e-2)
    assert jnp.allclose(h_n, h_ref_f32, atol=5e-2, rtol=5e-2)

    print("KERNEL_OK")
</pallas_src>

<mosaic_0001>
module attributes {stable_mosaic.version = 11 : i64} {
  func.func @_gru_kernel(%arg0: i32, %arg1: memref<8x3x2x32xf32, #tpu.memory_space<vmem>>, %arg2: memref<2x32xf32, #tpu.memory_space<vmem>>, %arg3: memref<3x32x32xbf16, #tpu.memory_space<vmem>>, %arg4: memref<1x32xf32, #tpu.memory_space<vmem>>, %arg5: memref<8x2x32xf32, #tpu.memory_space<vmem>>, %arg6: memref<2x32xf32, #tpu.memory_space<vmem>>, %arg7: memref<2x32xf32, #tpu.memory_space<vmem>>) attributes {dimension_semantics = [#tpu.dimension_semantics<arbitrary>], iteration_bounds = array<i64: 1>, scalar_prefetch = 0 : i64, scratch_operands = 1 : i64, tpu.core_type = #tpu.core_type<tc>, window_params = [{transform_indices = @transform_0, window_bounds = array<i64: 8, 3, 2, 32>}, {pipeline_mode = #tpu.pipeline_mode<synchronous>, transform_indices = @transform_1, window_bounds = array<i64: 2, 32>}, {pipeline_mode = #tpu.pipeline_mode<synchronous>, transform_indices = @transform_2, window_bounds = array<i64: 3, 32, 32>}, {pipeline_mode = #tpu.pipeline_mode<synchronous>, transform_indices = @transform_3, window_bounds = array<i64: 1, 32>}, {transform_indices = @transform_4, window_bounds = array<i64: 8, 2, 32>}, {pipeline_mode = #tpu.pipeline_mode<synchronous>, transform_indices = @transform_5, window_bounds = array<i64: 2, 32>}]} {
    %c0_i32 = arith.constant 0 : i32
    %0 = arith.cmpi eq, %arg0, %c0_i32 : i32
    %1 = arith.extui %0 : i1 to i32
    %c0_i32_0 = arith.constant 0 : i32
    %2 = arith.cmpi ne, %1, %c0_i32_0 : i32
    scf.if %2 {
      %c0_177 = arith.constant 0 : index
      %c0_178 = arith.constant 0 : index
      %295 = vector.load %arg2[%c0_177, %c0_178] : memref<2x32xf32, #tpu.memory_space<vmem>>, vector<2x32xf32>
      %c0_179 = arith.constant 0 : index
      %c0_180 = arith.constant 0 : index
      %296 = vector.load %arg7[%c0_179, %c0_180] : memref<2x32xf32, #tpu.memory_space<vmem>>, vector<2x32xf32>
      tpu.vector_store %arg7[%c0_179, %c0_180], %295 {strides = array<i32>} : memref<2x32xf32, #tpu.memory_space<vmem>>, vector<2x32xf32>,
    } else {
    }
    %c0 = arith.constant 0 : index
    %c0_1 = arith.constant 0 : index
    %c0_2 = arith.constant 0 : index
    %3 = vector.load %arg3[%c0, %c0_1, %c0_2] : memref<3x32x32xbf16, #tpu.memory_space<vmem>>, vector<1x32x32xbf16>
    %4 = vector.shape_cast %3 : vector<1x32x32xbf16> to vector<32x32xbf16>
    %c1 = arith.constant 1 : index
    %c0_3 = arith.constant 0 : index
    %c0_4 = arith.constant 0 : index
    %5 = vector.load %arg3[%c1, %c0_3, %c0_4] : memref<3x32x32xbf16, #tpu.memory_space<vmem>>, vector<1x32x32xbf16>
    %6 = vector.shape_cast %5 : vector<1x32x32xbf16> to vector<32x32xbf16>
    %c2 = arith.constant 2 : index
    %c0_5 = arith.constant 0 : index
    %c0_6 = arith.constant 0 : index
    %7 = vector.load %arg3[%c2, %c0_5, %c0_6] : memref<3x32x32xbf16, #tpu.memory_space<vmem>>, vector<1x32x32xbf16>
    %8 = vector.shape_cast %7 : vector<1x32x32xbf16> to vector<32x32xbf16>
    %c0_7 = arith.constant 0 : index
    %c0_8 = arith.constant 0 : index
    %9 = vector.load %arg4[%c0_7, %c0_8] : memref<1x32xf32, #tpu.memory_space<vmem>>, vector<1x32xf32>
    %c0_9 = arith.constant 0 : index
    %c0_10 = arith.constant 0 : index
    %10 = vector.load %arg7[%c0_9, %c0_10] : memref<2x32xf32, #tpu.memory_space<vmem>>, vector<2x32xf32>
    %11 = arith.truncf %10 : vector<2x32xf32> to vector<2x32xbf16>
    %cst = arith.constant dense<0.000000e+00> : vector<2x32xf32>
    %12 = tpu.matmul %11, %4, %cst {dimension_numbers = #tpu.dot_dimension_numbers<[1], [0], [0], [1], [0, 0, 1, 1], [], []>} : vector<2x32xbf16>, vector<32x32xbf16>, vector<2x32xf32> -> vector<2x32xf32>
    %cst_11 = arith.constant dense<0.000000e+00> : vector<2x32xf32>
    %13 = tpu.matmul %11, %6, %cst_11 {dimension_numbers = #tpu.dot_dimension_numbers<[1], [0], [0], [1], [0, 0, 1, 1], [], []>} : vector<2x32xbf16>, vector<32x32xbf16>, vector<2x32xf32> -> vector<2x32xf32>
    %cst_12 = arith.constant dense<0.000000e+00> : vector<2x32xf32>
    %14 = tpu.matmul %11, %8, %cst_12 {dimension_numbers = #tpu.dot_dimension_numbers<[1], [0], [0], [1], [0, 0, 1, 1], [], []>} : vector<2x32xbf16>, vector<32x32xbf16>, vector<2x32xf32> -> vector<2x32xf32>
    %c0_13 = arith.constant 0 : index
    %c0_14 = arith.constant 0 : index
    %c0_15 = arith.constant 0 : index
    %c0_16 = arith.constant 0 : index
    %15 = vector.load %arg1[%c0_13, %c0_14, %c0_15, %c0_16] : memref<8x3x2x32xf32, #tpu.memory_space<vmem>>, vector<1x1x2x32xf32>
    %16 = vector.shape_cast %15 : vector<1x1x2x32xf32> to vector<2x32xf32>
    %17 = arith.addf %16, %12 : vector<2x32xf32>
    %18 = arith.negf %17 : vector<2x32xf32>
    %19 = math.exp %18 : vector<2x32xf32>
    %cst_17 = arith.constant 1.000000e+00 : f32
    %20 = vector.broadcast %cst_17 : f32 to vector<2x32xf32>
    %21 = arith.addf %20, %19 : vector<2x32xf32>
    %22 = arith.divf %20, %21 : vector<2x32xf32>
    %c0_18 = arith.constant 0 : index
    %c1_19 = arith.constant 1 : index
    %c0_20 = arith.constant 0 : index
    %c0_21 = arith.constant 0 : index
    %23 = vector.load %arg1[%c0_18, %c1_19, %c0_20, %c0_21] : memref<8x3x2x32xf32, #tpu.memory_space<vmem>>, vector<1x1x2x32xf32>
    %24 = vector.shape_cast %23 : vector<1x1x2x32xf32> to vector<2x32xf32>
    %25 = arith.addf %24, %13 : vector<2x32xf32>
    %26 = arith.negf %25 : vector<2x32xf32>
    %27 = math.exp %26 : vector<2x32xf32>
    %cst_22 = arith.constant 1.000000e+00 : f32
    %28 = vector.broadcast %cst_22 : f32 to vector<2x32xf32>
    %29 = arith.addf %28, %27 : vector<2x32xf32>
    %30 = arith.divf %28, %29 : vector<2x32xf32>
    %c0_23 = arith.constant 0 : index
    %c2_24 = arith.constant 2 : index
    %c0_25 = arith.constant 0 : index
    %c0_26 = arith.constant 0 : index
    %31 = vector.load %arg1[%c0_23, %c2_24, %c0_25, %c0_26] : memref<8x3x2x32xf32, #tpu.memory_space<vmem>>, vector<1x1x2x32xf32>
    %32 = vector.shape_cast %31 : vector<1x1x2x32xf32> to vector<2x32xf32>
    %33 = vector.broadcast %9 : vector<1x32xf32> to vector<2x32xf32>
    %34 = arith.addf %14, %33 : vector<2x32xf32>
    %35 = arith.mulf %22, %34 : vector<2x32xf32>
    %36 = arith.addf %32, %35 : vector<2x32xf32>
    %37 = math.tanh %36 : vector<2x32xf32>
    %cst_27 = arith.constant 1.000000e+00 : f32
    %38 = vector.broadcast %cst_27 : f32 to vector<2x32xf32>
    %39 = arith.subf %38, %30 : vector<2x32xf32>
    %40 = arith.mulf %39, %37 : vector<2x32xf32>
    %41 = arith.mulf %30, %10 : vector<2x32xf32>
    %42 = arith.addf %40, %41 : vector<2x32xf32>
    %c0_28 = arith.constant 0 : index
    %c0_29 = arith.constant 0 : index
    %c0_30 = arith.constant 0 : index
    %43 = vector.load %arg5[%c0_28, %c0_29, %c0_30] : memref<8x2x32xf32, #tpu.memory_space<vmem>>, vector<1x2x32xf32>
    %44 = vector.shape_cast %43 : vector<1x2x32xf32> to vector<2x32xf32>
    %45 = vector.shape_cast %42 : vector<2x32xf32> to vector<1x2x32xf32>
    tpu.vector_store %arg5[%c0_28, %c0_29, %c0_30], %45 {strides = array<i32>} : memref<8x2x32xf32, #tpu.memory_space<vmem>>, vector<1x2x32xf32>,
    %46 = arith.truncf %42 : vector<2x32xf32> to vector<2x32xbf16>
    %cst_31 = arith.constant dense<0.000000e+00> : vector<2x32xf32>
    %47 = tpu.matmul %46, %4, %cst_31 {dimension_numbers = #tpu.dot_dimension_numbers<[1], [0], [0], [1], [0, 0, 1, 1], [], []>} : vector<2x32xbf16>, vector<32x32xbf16>, vector<2x32xf32> -> vector<2x32xf32>
    %cst_32 = arith.constant dense<0.000000e+00> : vector<2x32xf32>
    %48 = tpu.matmul %46, %6, %cst_32 {dimension_numbers = #tpu.dot_dimension_numbers<[1], [0], [0], [1], [0, 0, 1, 1], [], []>} : vector<2x32xbf16>, vector<32x32xbf16>, vector<2x32xf32> -> vector<2x32xf32>
    %cst_33 = arith.constant dense<0.000000e+00> : vector<2x32xf32>
    %49 = tpu.matmul %46, %8, %cst_33 {dimension_numbers = #tpu.dot_dimension_numbers<[1], [0], [0], [1], [0, 0, 1, 1], [], []>} : vector<2x32xbf16>, vector<32x32xbf16>, vector<2x32xf32> -> vector<2x32xf32>
    %c1_34 = arith.constant 1 : index
    %c0_35 = arith.constant 0 : index
    %c0_36 = arith.constant 0 : index
    %c0_37 = arith.constant 0 : index
    %50 = vector.load %arg1[%c1_34, %c0_35, %c0_36, %c0_37] : memref<8x3x2x32xf32, #tpu.memory_space<vmem>>, vector<1x1x2x32xf32>
    %51 = vector.shape_cast %50 : vector<1x1x2x32xf32> to vector<2x32xf32>
    %52 = arith.addf %51, %47 : vector<2x32xf32>
    %53 = arith.negf %52 : vector<2x32xf32>
    %54 = math.exp %53 : vector<2x32xf32>
    %cst_38 = arith.constant 1.000000e+00 : f32
    %55 = vector.broadcast %cst_38 : f32 to vector<2x32xf32>
    %56 = arith.addf %55, %54 : vector<2x32xf32>
    %57 = arith.divf %55, %56 : vector<2x32xf32>
    %c1_39 = arith.constant 1 : index
    %c1_40 = arith.constant 1 : index
    %c0_41 = arith.constant 0 : index
    %c0_42 = arith.constant 0 : index
    %58 = vector.load %arg1[%c1_39, %c1_40, %c0_41, %c0_42] : memref<8x3x2x32xf32, #tpu.memory_space<vmem>>, vector<1x1x2x32xf32>
    %59 = vector.shape_cast %58 : vector<1x1x2x32xf32> to vector<2x32xf32>
    %60 = arith.addf %59, %48 : vector<2x32xf32>
    %61 = arith.negf %60 : vector<2x32xf32>
    %62 = math.exp %61 : vector<2x32xf32>
    %cst_43 = arith.constant 1.000000e+00 : f32
    %63 = vector.broadcast %cst_43 : f32 to vector<2x32xf32>
    %64 = arith.addf %63, %62 : vector<2x32xf32>
    %65 = arith.divf %63, %64 : vector<2x32xf32>
    %c1_44 = arith.constant 1 : index
    %c2_45 = arith.constant 2 : index
    %c0_46 = arith.constant 0 : index
    %c0_47 = arith.constant 0 : index
    %66 = vector.load %arg1[%c1_44, %c2_45, %c0_46, %c0_47] : memref<8x3x2x32xf32, #tpu.memory_space<vmem>>, vector<1x1x2x32xf32>
    %67 = vector.shape_cast %66 : vector<1x1x2x32xf32> to vector<2x32xf32>
    %68 = vector.broadcast %9 : vector<1x32xf32> to vector<2x32xf32>
    %69 = arith.addf %49, %68 : vector<2x32xf32>
    %70 = arith.mulf %57, %69 : vector<2x32xf32>
    %71 = arith.addf %67, %70 : vector<2x32xf32>
    %72 = math.tanh %71 : vector<2x32xf32>
    %cst_48 = arith.constant 1.000000e+00 : f32
    %73 = vector.broadcast %cst_48 : f32 to vector<2x32xf32>
    %74 = arith.subf %73, %65 : vector<2x32xf32>
    %75 = arith.mulf %74, %72 : vector<2x32xf32>
    %76 = arith.mulf %65, %42 : vector<2x32xf32>
    %77 = arith.addf %75, %76 : vector<2x32xf32>
    %c1_49 = arith.constant 1 : index
    %c0_50 = arith.constant 0 : index
    %c0_51 = arith.constant 0 : index
    %78 = vector.load %arg5[%c1_49, %c0_50, %c0_51] : memref<8x2x32xf32, #tpu.memory_space<vmem>>, vector<1x2x32xf32>
    %79 = vector.shape_cast %78 : vector<1x2x32xf32> to vector<2x32xf32>
    %80 = vector.shape_cast %77 : vector<2x32xf32> to vector<1x2x32xf32>
    tpu.vector_store %arg5[%c1_49, %c0_50, %c0_51], %80 {strides = array<i32>} : memref<8x2x32xf32, #tpu.memory_space<vmem>>, vector<1x2x32xf32>,
    %81 = arith.truncf %77 : vector<2x32xf32> to vector<2x32xbf16>
    %cst_52 = arith.constant dense<0.000000e+00> : vector<2x32xf32>
    %82 = tpu.matmul %81, %4, %cst_52 {dimension_numbers = #tpu.dot_dimension_numbers<[1], [0], [0], [1], [0, 0, 1, 1], [], []>} : vector<2x32xbf16>, vector<32x32xbf16>, vector<2x32xf32> -> vector<2x32xf32>
    %cst_53 = arith.constant dense<0.000000e+00> : vector<2x32xf32>
    %83 = tpu.matmul %81, %6, %cst_53 {dimension_numbers = #tpu.dot_dimension_numbers<[1], [0], [0], [1], [0, 0, 1, 1], [], []>} : vector<2x32xbf16>, vector<32x32xbf16>, vector<2x32xf32> -> vector<2x32xf32>
    %cst_54 = arith.constant dense<0.000000e+00> : vector<2x32xf32>
    %84 = tpu.matmul %81, %8, %cst_54 {dimension_numbers = #tpu.dot_dimension_numbers<[1], [0], [0], [1], [0, 0, 1, 1], [], []>} : vector<2x32xbf16>, vector<32x32xbf16>, vector<2x32xf32> -> vector<2x32xf32>
    %c2_55 = arith.constant 2 : index
    %c0_56 = arith.constant 0 : index
    %c0_57 = arith.constant 0 : index
    %c0_58 = arith.constant 0 : index
    %85 = vector.load %arg1[%c2_55, %c0_56, %c0_57, %c0_58] : memref<8x3x2x32xf32, #tpu.memory_space<vmem>>, vector<1x1x2x32xf32>
    %86 = vector.shape_cast %85 : vector<1x1x2x32xf32> to vector<2x32xf32>
    %87 = arith.addf %86, %82 : vector<2x32xf32>
    %88 = arith.negf %87 : vector<2x32xf32>
    %89 = math.exp %88 : vector<2x32xf32>
    %cst_59 = arith.constant 1.000000e+00 : f32
    %90 = vector.broadcast %cst_59 : f32 to vector<2x32xf32>
    %91 = arith.addf %90, %89 : vector<2x32xf32>
    %92 = arith.divf %90, %91 : vector<2x32xf32>
    %c2_60 = arith.constant 2 : index
    %c1_61 = arith.constant 1 : index
    %c0_62 = arith.constant 0 : index
    %c0_63 = arith.constant 0 : index
    %93 = vector.load %arg1[%c2_60, %c1_61, %c0_62, %c0_63] : memref<8x3x2x32xf32, #tpu.memory_space<vmem>>, vector<1x1x2x32xf32>
    %94 = vector.shape_cast %93 : vector<1x1x2x32xf32> to vector<2x32xf32>
    %95 = arith.addf %94, %83 : vector<2x32xf32>
    %96 = arith.negf %95 : vector<2x32xf32>
    %97 = math.exp %96 : vector<2x32xf32>
    %cst_64 = arith.constant 1.000000e+00 : f32
    %98 = vector.broadcast %cst_64 : f32 to vector<2x32xf32>
    %99 = arith.addf %98, %97 : vector<2x32xf32>
    %100 = arith.divf %98, %99 : vector<2x32xf32>
    %c2_65 = arith.constant 2 : index
    %c2_66 = arith.constant 2 : index
    %c0_67 = arith.constant 0 : index
    %c0_68 = arith.constant 0 : index
    %101 = vector.load %arg1[%c2_65, %c2_66, %c0_67, %c0_68] : memref<8x3x2x32xf32, #tpu.memory_space<vmem>>, vector<1x1x2x32xf32>
    %102 = vector.shape_cast %101 : vector<1x1x2x32xf32> to vector<2x32xf32>
    %103 = vector.broadcast %9 : vector<1x32xf32> to vector<2x32xf32>
    %104 = arith.addf %84, %103 : vector<2x32xf32>
    %105 = arith.mulf %92, %104 : vector<2x32xf32>
    %106 = arith.addf %102, %105 : vector<2x32xf32>
    %107 = math.tanh %106 : vector<2x32xf32>
    %cst_69 = arith.constant 1.000000e+00 : f32
    %108 = vector.broadcast %cst_69 : f32 to vector<2x32xf32>
    %109 = arith.subf %108, %100 : vector<2x32xf32>
    %110 = arith.mulf %109, %107 : vector<2x32xf32>
    %111 = arith.mulf %100, %77 : vector<2x32xf32>
    %112 = arith.addf %110, %111 : vector<2x32xf32>
    %c2_70 = arith.constant 2 : index
    %c0_71 = arith.constant 0 : index
    %c0_72 = arith.constant 0 : index
    %113 = vector.load %arg5[%c2_70, %c0_71, %c0_72] : memref<8x2x32xf32, #tpu.memory_space<vmem>>, vector<1x2x32xf32>
    %114 = vector.shape_cast %113 : vector<1x2x32xf32> to vector<2x32xf32>
    %115 = vector.shape_cast %112 : vector<2x32xf32> to vector<1x2x32xf32>
    tpu.vector_store %arg5[%c2_70, %c0_71, %c0_72], %115 {strides = array<i32>} : memref<8x2x32xf32, #tpu.memory_space<vmem>>, vector<1x2x32xf32>,
    %116 = arith.truncf %112 : vector<2x32xf32> to vector<2x32xbf16>
    %cst_73 = arith.constant dense<0.000000e+00> : vector<2x32xf32>
    %117 = tpu.matmul %116, %4, %cst_73 {dimension_numbers = #tpu.dot_dimension_numbers<[1], [0], [0], [1], [0, 0, 1, 1], [], []>} : vector<2x32xbf16>, vector<32x32xbf16>, vector<2x32xf32> -> vector<2x32xf32>
    %cst_74 = arith.constant dense<0.000000e+00> : vector<2x32xf32>
    %118 = tpu.matmul %116, %6, %cst_74 {dimension_numbers = #tpu.dot_dimension_numbers<[1], [0], [0], [1], [0, 0, 1, 1], [], []>} : vector<2x32xbf16>, vector<32x32xbf16>, vector<2x32xf32> -> vector<2x32xf32>
    %cst_75 = arith.constant dense<0.000000e+00> : vector<2x32xf32>
    %119 = tpu.matmul %116, %8, %cst_75 {dimension_numbers = #tpu.dot_dimension_numbers<[1], [0], [0], [1], [0, 0, 1, 1], [], []>} : vector<2x32xbf16>, vector<32x32xbf16>, vector<2x32xf32> -> vector<2x32xf32>
    %c3 = arith.constant 3 : index
    %c0_76 = arith.constant 0 : index
    %c0_77 = arith.constant 0 : index
    %c0_78 = arith.constant 0 : index
    %120 = vector.load %arg1[%c3, %c0_76, %c0_77, %c0_78] : memref<8x3x2x32xf32, #tpu.memory_space<vmem>>, vector<1x1x2x32xf32>
    %121 = vector.shape_cast %120 : vector<1x1x2x32xf32> to vector<2x32xf32>
    %122 = arith.addf %121, %117 : vector<2x32xf32>
    %123 = arith.negf %122 : vector<2x32xf32>
    %124 = math.exp %123 : vector<2x32xf32>
    %cst_79 = arith.constant 1.000000e+00 : f32
    %125 = vector.broadcast %cst_79 : f32 to vector<2x32xf32>
    %126 = arith.addf %125, %124 : vector<2x32xf32>
    %127 = arith.divf %125, %126 : vector<2x32xf32>
    %c3_80 = arith.constant 3 : index
    %c1_81 = arith.constant 1 : index
    %c0_82 = arith.constant 0 : index
    %c0_83 = arith.constant 0 : index
    %128 = vector.load %arg1[%c3_80, %c1_81, %c0_82, %c0_83] : memref<8x3x2x32xf32, #tpu.memory_space<vmem>>, vector<1x1x2x32xf32>
    %129 = vector.shape_cast %128 : vector<1x1x2x32xf32> to vector<2x32xf32>
    %130 = arith.addf %129, %118 : vector<2x32xf32>
    %131 = arith.negf %130 : vector<2x32xf32>
    %132 = math.exp %131 : vector<2x32xf32>
    %cst_84 = arith.constant 1.000000e+00 : f32
    %133 = vector.broadcast %cst_84 : f32 to vector<2x32xf32>
    %134 = arith.addf %133, %132 : vector<2x32xf32>
    %135 = arith.divf %133, %134 : vector<2x32xf32>
    %c3_85 = arith.constant 3 : index
    %c2_86 = arith.constant 2 : index
    %c0_87 = arith.constant 0 : index
    %c0_88 = arith.constant 0 : index
    %136 = vector.load %arg1[%c3_85, %c2_86, %c0_87, %c0_88] : memref<8x3x2x32xf32, #tpu.memory_space<vmem>>, vector<1x1x2x32xf32>
    %137 = vector.shape_cast %136 : vector<1x1x2x32xf32> to vector<2x32xf32>
    %138 = vector.broadcast %9 : vector<1x32xf32> to vector<2x32xf32>
    %139 = arith.addf %119, %138 : vector<2x32xf32>
    %140 = arith.mulf %127, %139 : vector<2x32xf32>
    %141 = arith.addf %137, %140 : vector<2x32xf32>
    %142 = math.tanh %141 : vector<2x32xf32>
    %cst_89 = arith.constant 1.000000e+00 : f32
    %143 = vector.broadcast %cst_89 : f32 to vector<2x32xf32>
    %144 = arith.subf %143, %135 : vector<2x32xf32>
    %145 = arith.mulf %144, %142 : vector<2x32xf32>
    %146 = arith.mulf %135, %112 : vector<2x32xf32>
    %147 = arith.addf %145, %146 : vector<2x32xf32>
    %c3_90 = arith.constant 3 : index
    %c0_91 = arith.constant 0 : index
    %c0_92 = arith.constant 0 : index
    %148 = vector.load %arg5[%c3_90, %c0_91, %c0_92] : memref<8x2x32xf32, #tpu.memory_space<vmem>>, vector<1x2x32xf32>
    %149 = vector.shape_cast %148 : vector<1x2x32xf32> to vector<2x32xf32>
    %150 = vector.shape_cast %147 : vector<2x32xf32> to vector<1x2x32xf32>
    tpu.vector_store %arg5[%c3_90, %c0_91, %c0_92], %150 {strides = array<i32>} : memref<8x2x32xf32, #tpu.memory_space<vmem>>, vector<1x2x32xf32>,
    %151 = arith.truncf %147 : vector<2x32xf32> to vector<2x32xbf16>
    %cst_93 = arith.constant dense<0.000000e+00> : vector<2x32xf32>
    %152 = tpu.matmul %151, %4, %cst_93 {dimension_numbers = #tpu.dot_dimension_numbers<[1], [0], [0], [1], [0, 0, 1, 1], [], []>} : vector<2x32xbf16>, vector<32x32xbf16>, vector<2x32xf32> -> vector<2x32xf32>
    %cst_94 = arith.constant dense<0.000000e+00> : vector<2x32xf32>
    %153 = tpu.matmul %151, %6, %cst_94 {dimension_numbers = #tpu.dot_dimension_numbers<[1], [0], [0], [1], [0, 0, 1, 1], [], []>} : vector<2x32xbf16>, vector<32x32xbf16>, vector<2x32xf32> -> vector<2x32xf32>
    %cst_95 = arith.constant dense<0.000000e+00> : vector<2x32xf32>
    %154 = tpu.matmul %151, %8, %cst_95 {dimension_numbers = #tpu.dot_dimension_numbers<[1], [0], [0], [1], [0, 0, 1, 1], [], []>} : vector<2x32xbf16>, vector<32x32xbf16>, vector<2x32xf32> -> vector<2x32xf32>
    %c4 = arith.constant 4 : index
    %c0_96 = arith.constant 0 : index
    %c0_97 = arith.constant 0 : index
    %c0_98 = arith.constant 0 : index
    %155 = vector.load %arg1[%c4, %c0_96, %c0_97, %c0_98] : memref<8x3x2x32xf32, #tpu.memory_space<vmem>>, vector<1x1x2x32xf32>
    %156 = vector.shape_cast %155 : vector<1x1x2x32xf32> to vector<2x32xf32>
    %157 = arith.addf %156, %152 : vector<2x32xf32>
    %158 = arith.negf %157 : vector<2x32xf32>
    %159 = math.exp %158 : vector<2x32xf32>
    %cst_99 = arith.constant 1.000000e+00 : f32
    %160 = vector.broadcast %cst_99 : f32 to vector<2x32xf32>
    %161 = arith.addf %160, %159 : vector<2x32xf32>
    %162 = arith.divf %160, %161 : vector<2x32xf32>
    %c4_100 = arith.constant 4 : index
    %c1_101 = arith.constant 1 : index
    %c0_102 = arith.constant 0 : index
    %c0_103 = arith.constant 0 : index
    %163 = vector.load %arg1[%c4_100, %c1_101, %c0_102, %c0_103] : memref<8x3x2x32xf32, #tpu.memory_space<vmem>>, vector<1x1x2x32xf32>
    %164 = vector.shape_cast %163 : vector<1x1x2x32xf32> to vector<2x32xf32>
    %165 = arith.addf %164, %153 : vector<2x32xf32>
    %166 = arith.negf %165 : vector<2x32xf32>
    %167 = math.exp %166 : vector<2x32xf32>
    %cst_104 = arith.constant 1.000000e+00 : f32
    %168 = vector.broadcast %cst_104 : f32 to vector<2x32xf32>
    %169 = arith.addf %168, %167 : vector<2x32xf32>
    %170 = arith.divf %168, %169 : vector<2x32xf32>
    %c4_105 = arith.constant 4 : index
    %c2_106 = arith.constant 2 : index
    %c0_107 = arith.constant 0 : index
    %c0_108 = arith.constant 0 : index
    %171 = vector.load %arg1[%c4_105, %c2_106, %c0_107, %c0_108] : memref<8x3x2x32xf32, #tpu.memory_space<vmem>>, vector<1x1x2x32xf32>
    %172 = vector.shape_cast %171 : vector<1x1x2x32xf32> to vector<2x32xf32>
    %173 = vector.broadcast %9 : vector<1x32xf32> to vector<2x32xf32>
    %174 = arith.addf %154, %173 : vector<2x32xf32>
    %175 = arith.mulf %162, %174 : vector<2x32xf32>
    %176 = arith.addf %172, %175 : vector<2x32xf32>
    %177 = math.tanh %176 : vector<2x32xf32>
    %cst_109 = arith.constant 1.000000e+00 : f32
    %178 = vector.broadcast %cst_109 : f32 to vector<2x32xf32>
    %179 = arith.subf %178, %170 : vector<2x32xf32>
    %180 = arith.mulf %179, %177 : vector<2x32xf32>
    %181 = arith.mulf %170, %147 : vector<2x32xf32>
    %182 = arith.addf %180, %181 : vector<2x32xf32>
    %c4_110 = arith.constant 4 : index
    %c0_111 = arith.constant 0 : index
    %c0_112 = arith.constant 0 : index
    %183 = vector.load %arg5[%c4_110, %c0_111, %c0_112] : memref<8x2x32xf32, #tpu.memory_space<vmem>>, vector<1x2x32xf32>
    %184 = vector.shape_cast %183 : vector<1x2x32xf32> to vector<2x32xf32>
    %185 = vector.shape_cast %182 : vector<2x32xf32> to vector<1x2x32xf32>
    tpu.vector_store %arg5[%c4_110, %c0_111, %c0_112], %185 {strides = array<i32>} : memref<8x2x32xf32, #tpu.memory_space<vmem>>, vector<1x2x32xf32>,
    %186 = arith.truncf %182 : vector<2x32xf32> to vector<2x32xbf16>
    %cst_113 = arith.constant dense<0.000000e+00> : vector<2x32xf32>
    %187 = tpu.matmul %186, %4, %cst_113 {dimension_numbers = #tpu.dot_dimension_numbers<[1], [0], [0], [1], [0, 0, 1, 1], [], []>} : vector<2x32xbf16>, vector<32x32xbf16>, vector<2x32xf32> -> vector<2x32xf32>
    %cst_114 = arith.constant dense<0.000000e+00> : vector<2x32xf32>
    %188 = tpu.matmul %186, %6, %cst_114 {dimension_numbers = #tpu.dot_dimension_numbers<[1], [0], [0], [1], [0, 0, 1, 1], [], []>} : vector<2x32xbf16>, vector<32x32xbf16>, vector<2x32xf32> -> vector<2x32xf32>
    %cst_115 = arith.constant dense<0.000000e+00> : vector<2x32xf32>
    %189 = tpu.matmul %186, %8, %cst_115 {dimension_numbers = #tpu.dot_dimension_numbers<[1], [0], [0], [1], [0, 0, 1, 1], [], []>} : vector<2x32xbf16>, vector<32x32xbf16>, vector<2x32xf32> -> vector<2x32xf32>
    %c5 = arith.constant 5 : index
    %c0_116 = arith.constant 0 : index
    %c0_117 = arith.constant 0 : index
    %c0_118 = arith.constant 0 : index
    %190 = vector.load %arg1[%c5, %c0_116, %c0_117, %c0_118] : memref<8x3x2x32xf32, #tpu.memory_space<vmem>>, vector<1x1x2x32xf32>
    %191 = vector.shape_cast %190 : vector<1x1x2x32xf32> to vector<2x32xf32>
    %192 = arith.addf %191, %187 : vector<2x32xf32>
    %193 = arith.negf %192 : vector<2x32xf32>
    %194 = math.exp %193 : vector<2x32xf32>
    %cst_119 = arith.constant 1.000000e+00 : f32
    %195 = vector.broadcast %cst_119 : f32 to vector<2x32xf32>
    %196 = arith.addf %195, %194 : vector<2x32xf32>
    %197 = arith.divf %195, %196 : vector<2x32xf32>
    %c5_120 = arith.constant 5 : index
    %c1_121 = arith.constant 1 : index
    %c0_122 = arith.constant 0 : index
    %c0_123 = arith.constant 0 : index
    %198 = vector.load %arg1[%c5_120, %c1_121, %c0_122, %c0_123] : memref<8x3x2x32xf32, #tpu.memory_space<vmem>>, vector<1x1x2x32xf32>
    %199 = vector.shape_cast %198 : vector<1x1x2x32xf32> to vector<2x32xf32>
    %200 = arith.addf %199, %188 : vector<2x32xf32>
    %201 = arith.negf %200 : vector<2x32xf32>
    %202 = math.exp %201 : vector<2x32xf32>
    %cst_124 = arith.constant 1.000000e+00 : f32
    %203 = vector.broadcast %cst_124 : f32 to vector<2x32xf32>
    %204 = arith.addf %203, %202 : vector<2x32xf32>
    %205 = arith.divf %203, %204 : vector<2x32xf32>
    %c5_125 = arith.constant 5 : index
    %c2_126 = arith.constant 2 : index
    %c0_127 = arith.constant 0 : index
    %c0_128 = arith.constant 0 : index
    %206 = vector.load %arg1[%c5_125, %c2_126, %c0_127, %c0_128] : memref<8x3x2x32xf32, #tpu.memory_space<vmem>>, vector<1x1x2x32xf32>
    %207 = vector.shape_cast %206 : vector<1x1x2x32xf32> to vector<2x32xf32>
    %208 = vector.broadcast %9 : vector<1x32xf32> to vector<2x32xf32>
    %209 = arith.addf %189, %208 : vector<2x32xf32>
    %210 = arith.mulf %197, %209 : vector<2x32xf32>
    %211 = arith.addf %207, %210 : vector<2x32xf32>
    %212 = math.tanh %211 : vector<2x32xf32>
    %cst_129 = arith.constant 1.000000e+00 : f32
    %213 = vector.broadcast %cst_129 : f32 to vector<2x32xf32>
    %214 = arith.subf %213, %205 : vector<2x32xf32>
    %215 = arith.mulf %214, %212 : vector<2x32xf32>
    %216 = arith.mulf %205, %182 : vector<2x32xf32>
    %217 = arith.addf %215, %216 : vector<2x32xf32>
    %c5_130 = arith.constant 5 : index
    %c0_131 = arith.constant 0 : index
    %c0_132 = arith.constant 0 : index
    %218 = vector.load %arg5[%c5_130, %c0_131, %c0_132] : memref<8x2x32xf32, #tpu.memory_space<vmem>>, vector<1x2x32xf32>
    %219 = vector.shape_cast %218 : vector<1x2x32xf32> to vector<2x32xf32>
    %220 = vector.shape_cast %217 : vector<2x32xf32> to vector<1x2x32xf32>
    tpu.vector_store %arg5[%c5_130, %c0_131, %c0_132], %220 {strides = array<i32>} : memref<8x2x32xf32, #tpu.memory_space<vmem>>, vector<1x2x32xf32>,
    %221 = arith.truncf %217 : vector<2x32xf32> to vector<2x32xbf16>
    %cst_133 = arith.constant dense<0.000000e+00> : vector<2x32xf32>
    %222 = tpu.matmul %221, %4, %cst_133 {dimension_numbers = #tpu.dot_dimension_numbers<[1], [0], [0], [1], [0, 0, 1, 1], [], []>} : vector<2x32xbf16>, vector<32x32xbf16>, vector<2x32xf32> -> vector<2x32xf32>
    %cst_134 = arith.constant dense<0.000000e+00> : vector<2x32xf32>
    %223 = tpu.matmul %221, %6, %cst_134 {dimension_numbers = #tpu.dot_dimension_numbers<[1], [0], [0], [1], [0, 0, 1, 1], [], []>} : vector<2x32xbf16>, vector<32x32xbf16>, vector<2x32xf32> -> vector<2x32xf32>
    %cst_135 = arith.constant dense<0.000000e+00> : vector<2x32xf32>
    %224 = tpu.matmul %221, %8, %cst_135 {dimension_numbers = #tpu.dot_dimension_numbers<[1], [0], [0], [1], [0, 0, 1, 1], [], []>} : vector<2x32xbf16>, vector<32x32xbf16>, vector<2x32xf32> -> vector<2x32xf32>
    %c6 = arith.constant 6 : index
    %c0_136 = arith.constant 0 : index
    %c0_137 = arith.constant 0 : index
    %c0_138 = arith.constant 0 : index
    %225 = vector.load %arg1[%c6, %c0_136, %c0_137, %c0_138] : memref<8x3x2x32xf32, #tpu.memory_space<vmem>>, vector<1x1x2x32xf32>
    %226 = vector.shape_cast %225 : vector<1x1x2x32xf32> to vector<2x32xf32>
    %227 = arith.addf %226, %222 : vector<2x32xf32>
    %228 = arith.negf %227 : vector<2x32xf32>
    %229 = math.exp %228 : vector<2x32xf32>
    %cst_139 = arith.constant 1.000000e+00 : f32
    %230 = vector.broadcast %cst_139 : f32 to vector<2x32xf32>
    %231 = arith.addf %230, %229 : vector<2x32xf32>
    %232 = arith.divf %230, %231 : vector<2x32xf32>
    %c6_140 = arith.constant 6 : index
    %c1_141 = arith.constant 1 : index
    %c0_142 = arith.constant 0 : index
    %c0_143 = arith.constant 0 : index
    %233 = vector.load %arg1[%c6_140, %c1_141, %c0_142, %c0_143] : memref<8x3x2x32xf32, #tpu.memory_space<vmem>>, vector<1x1x2x32xf32>
    %234 = vector.shape_cast %233 : vector<1x1x2x32xf32> to vector<2x32xf32>
    %235 = arith.addf %234, %223 : vector<2x32xf32>
    %236 = arith.negf %235 : vector<2x32xf32>
    %237 = math.exp %236 : vector<2x32xf32>
    %cst_144 = arith.constant 1.000000e+00 : f32
    %238 = vector.broadcast %cst_144 : f32 to vector<2x32xf32>
    %239 = arith.addf %238, %237 : vector<2x32xf32>
    %240 = arith.divf %238, %239 : vector<2x32xf32>
    %c6_145 = arith.constant 6 : index
    %c2_146 = arith.constant 2 : index
    %c0_147 = arith.constant 0 : index
    %c0_148 = arith.constant 0 : index
    %241 = vector.load %arg1[%c6_145, %c2_146, %c0_147, %c0_148] : memref<8x3x2x32xf32, #tpu.memory_space<vmem>>, vector<1x1x2x32xf32>
    %242 = vector.shape_cast %241 : vector<1x1x2x32xf32> to vector<2x32xf32>
    %243 = vector.broadcast %9 : vector<1x32xf32> to vector<2x32xf32>
    %244 = arith.addf %224, %243 : vector<2x32xf32>
    %245 = arith.mulf %232, %244 : vector<2x32xf32>
    %246 = arith.addf %242, %245 : vector<2x32xf32>
    %247 = math.tanh %246 : vector<2x32xf32>
    %cst_149 = arith.constant 1.000000e+00 : f32
    %248 = vector.broadcast %cst_149 : f32 to vector<2x32xf32>
    %249 = arith.subf %248, %240 : vector<2x32xf32>
    %250 = arith.mulf %249, %247 : vector<2x32xf32>
    %251 = arith.mulf %240, %217 : vector<2x32xf32>
    %252 = arith.addf %250, %251 : vector<2x32xf32>
    %c6_150 = arith.constant 6 : index
    %c0_151 = arith.constant 0 : index
    %c0_152 = arith.constant 0 : index
    %253 = vector.load %arg5[%c6_150, %c0_151, %c0_152] : memref<8x2x32xf32, #tpu.memory_space<vmem>>, vector<1x2x32xf32>
    %254 = vector.shape_cast %253 : vector<1x2x32xf32> to vector<2x32xf32>
    %255 = vector.shape_cast %252 : vector<2x32xf32> to vector<1x2x32xf32>
    tpu.vector_store %arg5[%c6_150, %c0_151, %c0_152], %255 {strides = array<i32>} : memref<8x2x32xf32, #tpu.memory_space<vmem>>, vector<1x2x32xf32>,
    %256 = arith.truncf %252 : vector<2x32xf32> to vector<2x32xbf16>
    %cst_153 = arith.constant dense<0.000000e+00> : vector<2x32xf32>
    %257 = tpu.matmul %256, %4, %cst_153 {dimension_numbers = #tpu.dot_dimension_numbers<[1], [0], [0], [1], [0, 0, 1, 1], [], []>} : vector<2x32xbf16>, vector<32x32xbf16>, vector<2x32xf32> -> vector<2x32xf32>
    %cst_154 = arith.constant dense<0.000000e+00> : vector<2x32xf32>
    %258 = tpu.matmul %256, %6, %cst_154 {dimension_numbers = #tpu.dot_dimension_numbers<[1], [0], [0], [1], [0, 0, 1, 1], [], []>} : vector<2x32xbf16>, vector<32x32xbf16>, vector<2x32xf32> -> vector<2x32xf32>
    %cst_155 = arith.constant dense<0.000000e+00> : vector<2x32xf32>
    %259 = tpu.matmul %256, %8, %cst_155 {dimension_numbers = #tpu.dot_dimension_numbers<[1], [0], [0], [1], [0, 0, 1, 1], [], []>} : vector<2x32xbf16>, vector<32x32xbf16>, vector<2x32xf32> -> vector<2x32xf32>
    %c7 = arith.constant 7 : index
    %c0_156 = arith.constant 0 : index
    %c0_157 = arith.constant 0 : index
    %c0_158 = arith.constant 0 : index
    %260 = vector.load %arg1[%c7, %c0_156, %c0_157, %c0_158] : memref<8x3x2x32xf32, #tpu.memory_space<vmem>>, vector<1x1x2x32xf32>
    %261 = vector.shape_cast %260 : vector<1x1x2x32xf32> to vector<2x32xf32>
    %262 = arith.addf %261, %257 : vector<2x32xf32>
    %263 = arith.negf %262 : vector<2x32xf32>
    %264 = math.exp %263 : vector<2x32xf32>
    %cst_159 = arith.constant 1.000000e+00 : f32
    %265 = vector.broadcast %cst_159 : f32 to vector<2x32xf32>
    %266 = arith.addf %265, %264 : vector<2x32xf32>
    %267 = arith.divf %265, %266 : vector<2x32xf32>
    %c7_160 = arith.constant 7 : index
    %c1_161 = arith.constant 1 : index
    %c0_162 = arith.constant 0 : index
    %c0_163 = arith.constant 0 : index
    %268 = vector.load %arg1[%c7_160, %c1_161, %c0_162, %c0_163] : memref<8x3x2x32xf32, #tpu.memory_space<vmem>>, vector<1x1x2x32xf32>
    %269 = vector.shape_cast %268 : vector<1x1x2x32xf32> to vector<2x32xf32>
    %270 = arith.addf %269, %258 : vector<2x32xf32>
    %271 = arith.negf %270 : vector<2x32xf32>
    %272 = math.exp %271 : vector<2x32xf32>
    %cst_164 = arith.constant 1.000000e+00 : f32
    %273 = vector.broadcast %cst_164 : f32 to vector<2x32xf32>
    %274 = arith.addf %273, %272 : vector<2x32xf32>
    %275 = arith.divf %273, %274 : vector<2x32xf32>
    %c7_165 = arith.constant 7 : index
    %c2_166 = arith.constant 2 : index
    %c0_167 = arith.constant 0 : index
    %c0_168 = arith.constant 0 : index
    %276 = vector.load %arg1[%c7_165, %c2_166, %c0_167, %c0_168] : memref<8x3x2x32xf32, #tpu.memory_space<vmem>>, vector<1x1x2x32xf32>
    %277 = vector.shape_cast %276 : vector<1x1x2x32xf32> to vector<2x32xf32>
    %278 = vector.broadcast %9 : vector<1x32xf32> to vector<2x32xf32>
    %279 = arith.addf %259, %278 : vector<2x32xf32>
    %280 = arith.mulf %267, %279 : vector<2x32xf32>
    %281 = arith.addf %277, %280 : vector<2x32xf32>
    %282 = math.tanh %281 : vector<2x32xf32>
    %cst_169 = arith.constant 1.000000e+00 : f32
    %283 = vector.broadcast %cst_169 : f32 to vector<2x32xf32>
    %284 = arith.subf %283, %275 : vector<2x32xf32>
    %285 = arith.mulf %284, %282 : vector<2x32xf32>
    %286 = arith.mulf %275, %252 : vector<2x32xf32>
    %287 = arith.addf %285, %286 : vector<2x32xf32>
    %c7_170 = arith.constant 7 : index
    %c0_171 = arith.constant 0 : index
    %c0_172 = arith.constant 0 : index
    %288 = vector.load %arg5[%c7_170, %c0_171, %c0_172] : memref<8x2x32xf32, #tpu.memory_space<vmem>>, vector<1x2x32xf32>
    %289 = vector.shape_cast %288 : vector<1x2x32xf32> to vector<2x32xf32>
    %290 = vector.shape_cast %287 : vector<2x32xf32> to vector<1x2x32xf32>
    tpu.vector_store %arg5[%c7_170, %c0_171, %c0_172], %290 {strides = array<i32>} : memref<8x2x32xf32, #tpu.memory_space<vmem>>, vector<1x2x32xf32>,
    %c0_173 = arith.constant 0 : index
    %c0_174 = arith.constant 0 : index
    %291 = vector.load %arg7[%c0_173, %c0_174] : memref<2x32xf32, #tpu.memory_space<vmem>>, vector<2x32xf32>
    tpu.vector_store %arg7[%c0_173, %c0_174], %287 {strides = array<i32>} : memref<2x32xf32, #tpu.memory_space<vmem>>, vector<2x32xf32>,
    %c0_i32_175 = arith.constant 0 : i32
    %292 = arith.cmpi eq, %arg0, %c0_i32_175 : i32
    %293 = arith.extui %292 : i1 to i32
    %c0_i32_176 = arith.constant 0 : i32
    %294 = arith.cmpi ne, %293, %c0_i32_176 : i32
    scf.if %294 {
      %c0_177 = arith.constant 0 : index
      %c0_178 = arith.constant 0 : index
      %295 = vector.load %arg6[%c0_177, %c0_178] : memref<2x32xf32, #tpu.memory_space<vmem>>, vector<2x32xf32>
      tpu.vector_store %arg6[%c0_177, %c0_178], %287 {strides = array<i32>} : memref<2x32xf32, #tpu.memory_space<vmem>>, vector<2x32xf32>,
    } else {
    }
    return
  }
  func.func @transform_0(%arg0: i32) -> (i32, i32, i32, i32) {
    %c0_i32 = arith.constant 0 : i32
    %c0_i32_0 = arith.constant 0 : i32
    %c0_i32_1 = arith.constant 0 : i32
    %c0_i32_2 = arith.constant 0 : i32
    return %arg0, %c0_i32, %c0_i32_0, %c0_i32_1 : i32, i32, i32, i32
  }
  func.func @transform_1(%arg0: i32) -> (i32, i32) {
    %c0_i32 = arith.constant 0 : i32
    %c0_i32_0 = arith.constant 0 : i32
    %c0_i32_1 = arith.constant 0 : i32
    return %c0_i32, %c0_i32_0 : i32, i32
  }
  func.func @transform_2(%arg0: i32) -> (i32, i32, i32) {
    %c0_i32 = arith.constant 0 : i32
    %c0_i32_0 = arith.constant 0 : i32
    %c0_i32_1 = arith.constant 0 : i32
    %c0_i32_2 = arith.constant 0 : i32
    return %c0_i32, %c0_i32_0, %c0_i32_1 : i32, i32, i32
  }
  func.func @transform_3(%arg0: i32) -> (i32, i32) {
    %c0_i32 = arith.constant 0 : i32
    %c0_i32_0 = arith.constant 0 : i32
    %c0_i32_1 = arith.constant 0 : i32
    return %c0_i32, %c0_i32_0 : i32, i32
  }
  func.func @transform_4(%arg0: i32) -> (i32, i32, i32) {
    %c0_i32 = arith.constant 0 : i32
    %c0_i32_0 = arith.constant 0 : i32
    %c0_i32_1 = arith.constant 0 : i32
    return %arg0, %c0_i32, %c0_i32_0 : i32, i32, i32
  }
  func.func @transform_5(%arg0: i32) -> (i32, i32) {
    %c0_i32 = arith.constant 0 : i32
    %c0_i32_0 = arith.constant 0 : i32
    %c0_i32_1 = arith.constant 0 : i32
    return %c0_i32, %c0_i32_0 : i32, i32
  }
}

</mosaic_0001>

<bundles_post_ra>
// kernel: tpu_custom_call.1
= control target key start
LH: loop header
LB: loop body
LE: loop exit
PB: predicated region body
PF: predicated region fallthrough
CT: control target
= control target key end

     0   :  { %11 = vsyncpa [#allocation4], 0  ;;  %s2187_s0 = inlined_call_operand.hbm [shape: f32[8,3,2,32], index: 0, kind: input, shape index: {}]   ;;  %s2188_s1 = inlined_call_operand.vmem [shape: f32[2,32], index: 1, kind: input, shape index: {}]   ;;  %s2189_s2 = inlined_call_operand.hbm [shape: bf16[3,32,32], index: 2, kind: input, shape index: {}]   ;;  %s2190_s3 = inlined_call_operand.vmem [shape: f32[1,32], index: 3, kind: input, shape index: {}]   ;;  %s2191_s4 = inlined_call_operand.hbm [shape: f32[8,2,32], index: 4, kind: output, shape index: {0}]   ;;  %s2192_s5 = inlined_call_operand.hbm [shape: f32[2,32], index: 5, kind: output, shape index: {1}]  }
   0x1   :  { %12 = vsyncpa [#allocation7], 0 }
   0x2   :  { %13 = vsyncpa [#allocation5], 0 }
   0x3   :  { %14 = vsyncpa [#allocation10], 0  ;;  %s1879_s18 = smov [#allocation3]   ;;  %s1783_s22 = scalar_lea.hbm %s2187_s0, 768 }
   0x4   :  { %s20_s19 = sshll.u32 %s1879_s18, 4  ;;  %p1784_p0 = scmp.ne.s32.totalorder %s2187_s0, %s1783_s22  ;;  %s21_s19 = int_to_ptr.vmem [resolvable:$true] %s20_s19 }
   0x5   :  { %p1787_p1 = scmp.lt.u32.totalorder %s1783_s22, %s2187_s0 }
   0x7   :  { %p1789_p2 = pnand %p1787_p1, %p1784_p0 }
   0x9   :  { %1792 = shalt.err (!%p1789_p2)
}
   0xa   :  { %s1793_s27 = scalar_lea.vmem %s21_s19, 768  ;;  %p1798_p4 = scmp.lt.s32.totalorder %s21_s19, %s21_s19 }
   0xb   :  { %p1794_p3 = scmp.ne.s32.totalorder %s21_s19, %s1793_s27  ;;  %p1799_p5 = scmp.lt.s32.totalorder %s1793_s27, %s1793_s27 }
   0xd   :  { %p1800_p6 = por %p1799_p5, %p1798_p4 }
   0xf   :  { %p1801_p7 = pnand %p1800_p6, %p1794_p3 }
  0x11   :  { %1804 = shalt.err (!%p1801_p7)
}
  0x12   :  { %s1880_s28 = smov 32   ;;  %s1881_s29 = smov 2  }
  0x13   :  { %26 = dma.hbm_to_vmem [thread:$0]  %s2187_s0, 768, %s21_s19, [#allocation4], %s1880_s28, %s1880_s28, %s1881_s29  }
  0x14   :  { %s1882_s7 = smov [#allocation6]   ;;  %s1805_s11 = scalar_lea.hbm %s2189_s2, 768 }
  0x15   :  { %s34_s8 = sshll.u32 %s1882_s7, 4  ;;  %p1806_p8 = scmp.ne.s32.totalorder %s2189_s2, %s1805_s11  ;;  %s35_s8 = int_to_ptr.vmem [resolvable:$true] %s34_s8 }
  0x16   :  { %p1809_p9 = scmp.lt.u32.totalorder %s1805_s11, %s2189_s2 }
  0x18   :  { %p1811_p10 = pnand %p1809_p9, %p1806_p8 }
  0x1a   :  { %1814 = shalt.err (!%p1811_p10)
}
  0x1b   :  { %s1815_s16 = scalar_lea.vmem %s35_s8, 768  ;;  %p1820_p12 = scmp.lt.s32.totalorder %s35_s8, %s35_s8 }
  0x1c   :  { %p1816_p11 = scmp.ne.s32.totalorder %s35_s8, %s1815_s16  ;;  %p1821_p13 = scmp.lt.s32.totalorder %s1815_s16, %s1815_s16 }
  0x1e   :  { %p1822_p0 = por %p1821_p13, %p1820_p12 }
  0x20   :  { %p1823_p1 = pnand %p1822_p0, %p1816_p11 }
  0x22   :  { %1826 = shalt.err (!%p1823_p1)
}
  0x23   :  { %s1883_s0 = smov 64   ;;  %s1884_s17 = smov 4  }
  0x24   :  { %40 = dma.hbm_to_vmem [thread:$0]  %s2189_s2, 768, %s35_s8, [#allocation7], %s1883_s0, %s1883_s0, %s1884_s17  }
  0x25   :  { %1871 = dma.done.wait [#allocation4], 768  }
  0x26   :  { %1872 = vsyncadd [#allocation4], 4294966528 }
  0x27   :  { %1873 = dma.done.wait [#allocation7], 768  }
  0x28   :  { %1874 = vsyncadd [#allocation7], 4294966528  ;;  %v1885_v0 = vmov 0.0   ;;  %vm1886_vm0 = vmmov 0   ;;  %v1952_v1 = vld [vmem:[#allocation6] sm:$0xff]   ;;  %vm55_vm1 = vcmask 254976  }
  0x29   :  { %1495 = vmatprep.subr.bf16.mxu0 %v1885_v0  ;;  %1499 = vmatprep.mubr.msk.bf16.mxu0 %vm1886_vm0, %v1885_v0  ;;  %v1954_v2 = vld [vmem:[#allocation6 + $0x8] sm:$0xff]   ;;  %v1962_v4 = vld [vmem:[#allocation6 + $0x10] sm:$0xff]   ;;  %v1965_v5 = vld [vmem:[#allocation6 + $0x18] sm:$0xff]   ;;  %vm86_vm2 = vcmask 261120   ;;  %s1888_s23 = smov [#allocation9]  }
  0x2a   :  { %1503 = vmatprep.subr.bf16.mxu1 %v1885_v0  ;;  %1507 = vmatprep.mubr.msk.bf16.mxu1 %vm1886_vm0, %v1885_v0  ;;  %v54_v3 = vld [vmem:[%s2188_s1] sm:$0x3]  ;;  %v1971_v7 = vld [vmem:[#allocation6 + $0x20] sm:$0xff]   ;;  %v182_v10 = vld [vmem:[#allocation3] sm:$0x3]  ;;  %s1362_s24 = sshll.u32 %s1888_s23, 4  ;;  %s2150_s24 = int_to_ptr.vmem [resolvable:$true] %s1362_s24 }
  0x2b   :  { %1496 = vmatpush3.bf16.msra.mxu0 %v1952_v1  ;;  %56 = vst.msk [vmem:[#allocation2] sm:$0x3] %vm55_vm1, %v54_v3  ;;  %1504 = vmatpush3.bf16.msra.mxu1 %v1962_v4  ;;  %v1977_v9 = vld [vmem:[#allocation6 + $0x28] sm:$0xff]   ;;  %v191_v11 = vld [vmem:[#allocation3 + $0x2] sm:$0x3] }
  0x2c   :  { %1497 = vmatprep.subr.bf16.mxu0 %v1885_v0  ;;  %1505 = vmatprep.subr.bf16.mxu1 %v1885_v0  ;;  %v2000_v31 = vld [vmem:[%s2190_s3] ss:$0 sm:$0xff]  ;;  %v200_v35 = vld [vmem:[#allocation3 + $0x4] sm:$0x3]  ;;  %v353_v45 = vld [vmem:[#allocation3 + $0x6] sm:$0x3] }
  0x2d   :  { %v362_v49 = vld [vmem:[#allocation3 + $0x8] sm:$0x3]  ;;  %s1887_s3 = smov [#allocation8]  }
  0x2e   :  { %s1349_s22 = sshll.u32 %s1887_s3, 4  ;;  %s1350_s22 = int_to_ptr.vmem [resolvable:$true] %s1349_s22 }
  0x2f   :  { %1498 = vmatpush3.bf16.msra.mxu0 %v1954_v2  ;;  %1506 = vmatpush3.bf16.msra.mxu1 %v1965_v5  ;;  %s1827_s25 = scalar_lea.vmem %s1350_s22, 256  ;;  %p1832_p3 = scmp.lt.s32.totalorder %s1350_s22, %s1350_s22 }
  0x30   :  { %1511 = vmatprep.subr.bf16.mxu0 %v1885_v0  ;;  %1519 = vmatprep.subr.bf16.mxu1 %v1885_v0  ;;  %p1828_p2 = scmp.ne.s32.totalorder %s1350_s22, %s1827_s25  ;;  %p1833_p4 = scmp.lt.s32.totalorder %s1827_s25, %s1827_s25 }
  0x32   :  { %v72_v6 = vld [vmem:[#allocation2] sm:$0x3]  ;;  %p1834_p5 = por %p1833_p4, %p1832_p3 }
  0x33   :  { %v73_v8 = vpack.c.bf16 %v72_v6, %v72_v6 }
  0x34   :  { %p1835_p6 = pnand %p1834_p5, %p1828_p2 }
  0x35   :  { %1500 = vmatmul.mubr.msk.bf16.vlgmr.msra.gmra.mrb[0].mxu0 %vm86_vm2, %v73_v8  ;;  %1508 = vmatmul.mubr.msk.bf16.vlgmr.msra.gmra.mrb[0].mxu1 %vm86_vm2, %v73_v8 }
  0x36   :  { %1512 = vmatpush3.bf16.msra.mxu0 %v1971_v7  ;;  %1515 = vmatprep.mubr.msk.bf16.mxu0 %vm1886_vm0, %v1885_v0 }
  0x37   :  { %1513 = vmatprep.subr.bf16.mxu0 %v1885_v0  ;;  %1520 = vmatpush3.bf16.msra.mxu1 %v1952_v1 }
  0x38   :  { %1521 = vmatprep.subr.bf16.mxu1 %v1885_v0  ;;  %1523 = vmatprep.mubr.msk.bf16.mxu1 %vm1886_vm0, %v1885_v0 }
  0x3a   :  { %1514 = vmatpush3.bf16.msra.mxu0 %v1977_v9 }
  0x3b   :  { %1527 = vmatprep.subr.bf16.mxu0 %v1885_v0  ;;  %1522 = vmatpush3.bf16.msra.mxu1 %v1954_v2 }
  0x3c   :  { %1535 = vmatprep.subr.bf16.mxu1 %v1885_v0 }
  0x3d   :  { %1516 = vmatmul.mubr.msk.bf16.vlgmr.msra.gmra.mrb[4].mxu0 %vm86_vm2, %v73_v8 }
  0x3e   :  { %1528 = vmatpush3.bf16.msra.mxu0 %v1962_v4  ;;  %1531 = vmatprep.mubr.msk.bf16.mxu0 %vm1886_vm0, %v1885_v0 }
  0x3f   :  { %1529 = vmatprep.subr.bf16.mxu0 %v1885_v0 }
  0x42   :  { %1530 = vmatpush3.bf16.msra.mxu0 %v1965_v5 }
  0x43   :  { %1543 = vmatprep.subr.bf16.mxu0 %v1885_v0 }
 0x108   :  { %v124_v12 = vpop.f32.mrb[0].mxu0  ;;  %v176_v13 = vpop.f32.mrb[0].mxu1 }
 0x109   :  { %v183_v14 = vadd.f32 %v182_v10, %v124_v12  ;;  %v1501_v15 = vpop.f32.mrb[1].mxu0  ;;  %v1509_v16 = vpop.f32.mrb[1].mxu1  ;;  %v192_v18 = vadd.f32 %v191_v11, %v176_v13  ;;  %v371_v12 = vld [vmem:[#allocation3 + $0xa] sm:$0x3] }
 0x10a   :  { %v127_v17 = vpop.f32.mrb[2].mxu0  ;;  %v179_v19 = vpop.f32.mrb[2].mxu1 }
 0x10b   :  { %v1382_v20 = vmul.f32 -1.442695, %v183_v14  ;;  %v1502_v21 = vpop.f32.mrb[3].mxu0  ;;  %v1510_v22 = vpop.f32.mrb[3].mxu1  ;;  %v1383_v23 = vmul.f32 -1.442695, %v192_v18 }
 0x10c   :  { %v506_v22 = vld [vmem:[#allocation3 + $0xc] sm:$0x3] }
 0x10d   :  { %1703 = vpow2.f32 %v1382_v20 }
 0x10e   :  { %1705 = vpow2.f32 %v1383_v23 }
 0x110   :  { %v253_v24 = vpop.f32.mrb[4].mxu0 }
 0x111   :  { %v1517_v25 = vpop.f32.mrb[5].mxu0  ;;  %v254_v33 = vadd.f32 %v2000_v31, %v253_v24 }
 0x112   :  { %v256_v26 = vpop.f32.mrb[6].mxu0 }
 0x113   :  { %v1518_v27 = vpop.f32.mrb[7].mxu0  ;;  %v515_v26 = vld [vmem:[#allocation3 + $0xe] sm:$0x3] }
 0x117   :  { %v1704_v28 = vpop.eup %1703 }
 0x118   :  { %v187_v29 = vadd.f32 1.0, %v1704_v28  ;;  %v1706_v30 = vpop.eup %1705 }
 0x119   :  { %v196_v32 = vadd.f32 1.0, %v1706_v30 }
 0x11a   :  { %1707 = vrcp.f32 %v187_v29 }
 0x11b   :  { %1709 = vrcp.f32 %v196_v32 }
 0x124   :  { %v1708_v34 = vpop.eup %1707 }
 0x125   :  { %v259_v36 = vmul.f32 %v1708_v34, %v254_v33  ;;  %v1710_v38 = vpop.eup %1709 }
 0x126   :  { %v262_v39 = vsub.f32 1.0, %v1710_v38  ;;  %v264_v41 = vmul.f32 %v1710_v38, %v72_v6 }
 0x127   :  { %v260_v37 = vadd.f32 %v259_v36, %v200_v35 }
 0x129   :  { %1711 = vtanh.f32 %v260_v37 }
 0x133   :  { %v1712_v40 = vpop.eup %1711 }
 0x134   :  { %v263_v42 = vmul.f32 %v1712_v40, %v262_v39 }
 0x136   :  { %v265_v43 = vadd.f32 %v264_v41, %v263_v42 }
 0x138   :  { %267 = vst.msk [vmem:[#allocation8] sm:$0x3] %vm55_vm1, %v265_v43  ;;  %v268_v44 = vpack.c.bf16 %v265_v43, %v265_v43 }
 0x13a   :  { %1524 = vmatmul.mubr.msk.bf16.vlgmr.msra.gmra.mrb[4].mxu1 %vm86_vm2, %v268_v44  ;;  %1532 = vmatmul.mubr.msk.bf16.vlgmr.msra.gmra.mrb[8].mxu0 %vm86_vm2, %v268_v44 }
 0x13b   :  { %1536 = vmatpush3.bf16.msra.mxu1 %v1971_v7  ;;  %1539 = vmatprep.mubr.msk.bf16.mxu1 %vm1886_vm0, %v1885_v0 }
 0x13c   :  { %1537 = vmatprep.subr.bf16.mxu1 %v1885_v0  ;;  %1544 = vmatpush3.bf16.msra.mxu0 %v1952_v1 }
 0x13d   :  { %1545 = vmatprep.subr.bf16.mxu0 %v1885_v0  ;;  %1547 = vmatprep.mubr.msk.bf16.mxu0 %vm1886_vm0, %v1885_v0 }
 0x13f   :  { %1538 = vmatpush3.bf16.msra.mxu1 %v1977_v9 }
 0x140   :  { %1551 = vmatprep.subr.bf16.mxu1 %v1885_v0  ;;  %1546 = vmatpush3.bf16.msra.mxu0 %v1954_v2 }
 0x141   :  { %1559 = vmatprep.subr.bf16.mxu0 %v1885_v0 }
 0x142   :  { %1540 = vmatmul.mubr.msk.bf16.vlgmr.msra.gmra.mrb[8].mxu1 %vm86_vm2, %v268_v44 }
 0x143   :  { %1552 = vmatpush3.bf16.msra.mxu1 %v1962_v4  ;;  %1555 = vmatprep.mubr.msk.bf16.mxu1 %vm1886_vm0, %v1885_v0 }
 0x144   :  { %1553 = vmatprep.subr.bf16.mxu1 %v1885_v0 }
 0x147   :  { %1554 = vmatpush3.bf16.msra.mxu1 %v1965_v5 }
 0x148   :  { %1567 = vmatprep.subr.bf16.mxu1 %v1885_v0 }
 0x20d   :  { %v306_v46 = vpop.f32.mrb[4].mxu1  ;;  %v346_v47 = vpop.f32.mrb[8].mxu0 }
 0x20e   :  { %v354_v48 = vadd.f32 %v353_v45, %v306_v46  ;;  %v1525_v50 = vpop.f32.mrb[5].mxu1  ;;  %v1533_v51 = vpop.f32.mrb[9].mxu0  ;;  %v363_v57 = vadd.f32 %v362_v49, %v346_v47  ;;  %v524_v47 = vld [vmem:[#allocation3 + $0x10] sm:$0x3] }
 0x20f   :  { %v309_v52 = vpop.f32.mrb[6].mxu1  ;;  %v349_v53 = vpop.f32.mrb[10].mxu0 }
 0x210   :  { %v1390_v54 = vmul.f32 -1.442695, %v354_v48  ;;  %v1526_v55 = vpop.f32.mrb[7].mxu1  ;;  %v1534_v56 = vpop.f32.mrb[11].mxu0  ;;  %v1391_v58 = vmul.f32 -1.442695, %v363_v57 }
 0x211   :  { %v659_v57 = vld [vmem:[#allocation3 + $0x12] sm:$0x3] }
 0x212   :  { %1713 = vpow2.f32 %v1390_v54 }
 0x213   :  { %1715 = vpow2.f32 %v1391_v58 }
 0x215   :  { %v406_v59 = vpop.f32.mrb[8].mxu1 }
 0x216   :  { %v1541_v60 = vpop.f32.mrb[9].mxu1  ;;  %v407_v10 = vadd.f32 %v2000_v31, %v406_v59 }
 0x217   :  { %v409_v61 = vpop.f32.mrb[10].mxu1 }
 0x218   :  { %v1542_v62 = vpop.f32.mrb[11].mxu1  ;;  %v668_v61 = vld [vmem:[#allocation3 + $0x14] sm:$0x3] }
 0x21c   :  { %v1714_v63 = vpop.eup %1713 }
 0x21d   :  { %v358_v3 = vadd.f32 1.0, %v1714_v63  ;;  %v1716_v6 = vpop.eup %1715 }
 0x21e   :  { %v367_v8 = vadd.f32 1.0, %v1716_v6 }
 0x21f   :  { %1717 = vrcp.f32 %v358_v3 }
 0x220   :  { %1719 = vrcp.f32 %v367_v8 }
 0x229   :  { %v1718_v11 = vpop.eup %1717 }
 0x22a   :  { %v412_v13 = vmul.f32 %v1718_v11, %v407_v10  ;;  %v1720_v15 = vpop.eup %1719 }
 0x22b   :  { %v415_v16 = vsub.f32 1.0, %v1720_v15  ;;  %v417_v18 = vmul.f32 %v1720_v15, %v265_v43 }
 0x22c   :  { %v413_v14 = vadd.f32 %v412_v13, %v371_v12 }
 0x22e   :  { %1721 = vtanh.f32 %v413_v14 }
 0x238   :  { %v1722_v17 = vpop.eup %1721 }
 0x239   :  { %v416_v19 = vmul.f32 %v1722_v17, %v415_v16 }
 0x23b   :  { %v418_v20 = vadd.f32 %v417_v18, %v416_v19 }
 0x23d   :  { %420 = vst.msk [vmem:[#allocation8 + $0x2] sm:$0x3] %vm55_vm1, %v418_v20  ;;  %v421_v21 = vpack.c.bf16 %v418_v20, %v418_v20 }
 0x23f   :  { %1548 = vmatmul.mubr.msk.bf16.vlgmr.msra.gmra.mrb[12].mxu0 %vm86_vm2, %v421_v21  ;;  %1556 = vmatmul.mubr.msk.bf16.vlgmr.msra.gmra.mrb[12].mxu1 %vm86_vm2, %v421_v21 }
 0x240   :  { %1560 = vmatpush3.bf16.msra.mxu0 %v1971_v7  ;;  %1563 = vmatprep.mubr.msk.bf16.mxu0 %vm1886_vm0, %v1885_v0 }
 0x241   :  { %1561 = vmatprep.subr.bf16.mxu0 %v1885_v0  ;;  %1568 = vmatpush3.bf16.msra.mxu1 %v1952_v1 }
 0x242   :  { %1569 = vmatprep.subr.bf16.mxu1 %v1885_v0  ;;  %1571 = vmatprep.mubr.msk.bf16.mxu1 %vm1886_vm0, %v1885_v0 }
 0x244   :  { %1562 = vmatpush3.bf16.msra.mxu0 %v1977_v9 }
 0x245   :  { %1575 = vmatprep.subr.bf16.mxu0 %v1885_v0  ;;  %1570 = vmatpush3.bf16.msra.mxu1 %v1954_v2 }
 0x246   :  { %1583 = vmatprep.subr.bf16.mxu1 %v1885_v0 }
 0x247   :  { %1564 = vmatmul.mubr.msk.bf16.vlgmr.msra.gmra.mrb[16].mxu0 %vm86_vm2, %v421_v21 }
 0x248   :  { %1576 = vmatpush3.bf16.msra.mxu0 %v1962_v4  ;;  %1579 = vmatprep.mubr.msk.bf16.mxu0 %vm1886_vm0, %v1885_v0 }
 0x249   :  { %1577 = vmatprep.subr.bf16.mxu0 %v1885_v0 }
 0x24c   :  { %1578 = vmatpush3.bf16.msra.mxu0 %v1965_v5 }
 0x24d   :  { %1591 = vmatprep.subr.bf16.mxu0 %v1885_v0 }
 0x312   :  { %v459_v23 = vpop.f32.mrb[12].mxu0  ;;  %v499_v24 = vpop.f32.mrb[12].mxu1 }
 0x313   :  { %v507_v25 = vadd.f32 %v506_v22, %v459_v23  ;;  %v1549_v27 = vpop.f32.mrb[13].mxu0  ;;  %v1557_v28 = vpop.f32.mrb[13].mxu1  ;;  %v516_v35 = vadd.f32 %v515_v26, %v499_v24  ;;  %v677_v24 = vld [vmem:[#allocation3 + $0x16] sm:$0x3] }
 0x314   :  { %v462_v29 = vpop.f32.mrb[14].mxu0  ;;  %v502_v30 = vpop.f32.mrb[14].mxu1 }
 0x315   :  { %v1395_v32 = vmul.f32 -1.442695, %v507_v25  ;;  %v1550_v33 = vpop.f32.mrb[15].mxu0  ;;  %v1558_v34 = vpop.f32.mrb[15].mxu1  ;;  %v1396_v36 = vmul.f32 -1.442695, %v516_v35 }
 0x316   :  { %v812_v35 = vld [vmem:[#allocation3 + $0x18] sm:$0x3] }
 0x317   :  { %1723 = vpow2.f32 %v1395_v32 }
 0x318   :  { %1725 = vpow2.f32 %v1396_v36 }
 0x31a   :  { %v559_v37 = vpop.f32.mrb[16].mxu0 }
 0x31b   :  { %v1565_v38 = vpop.f32.mrb[17].mxu0  ;;  %v560_v45 = vadd.f32 %v2000_v31, %v559_v37 }
 0x31c   :  { %v562_v39 = vpop.f32.mrb[18].mxu0 }
 0x31d   :  { %v1566_v40 = vpop.f32.mrb[19].mxu0  ;;  %v821_v39 = vld [vmem:[#allocation3 + $0x1a] sm:$0x3] }
 0x321   :  { %v1724_v41 = vpop.eup %1723 }
 0x322   :  { %v511_v42 = vadd.f32 1.0, %v1724_v41  ;;  %v1726_v43 = vpop.eup %1725 }
 0x323   :  { %v520_v44 = vadd.f32 1.0, %v1726_v43 }
 0x324   :  { %1727 = vrcp.f32 %v511_v42 }
 0x325   :  { %1729 = vrcp.f32 %v520_v44 }
 0x32e   :  { %v1728_v46 = vpop.eup %1727 }
 0x32f   :  { %v565_v48 = vmul.f32 %v1728_v46, %v560_v45  ;;  %v1730_v50 = vpop.eup %1729 }
 0x330   :  { %v568_v51 = vsub.f32 1.0, %v1730_v50  ;;  %v570_v53 = vmul.f32 %v1730_v50, %v418_v20 }
 0x331   :  { %v566_v49 = vadd.f32 %v565_v48, %v524_v47 }
 0x333   :  { %1731 = vtanh.f32 %v566_v49 }
 0x33d   :  { %v1732_v52 = vpop.eup %1731 }
 0x33e   :  { %v569_v54 = vmul.f32 %v1732_v52, %v568_v51 }
 0x340   :  { %v571_v55 = vadd.f32 %v570_v53, %v569_v54 }
 0x342   :  { %573 = vst.msk [vmem:[#allocation8 + $0x4] sm:$0x3] %vm55_vm1, %v571_v55  ;;  %v574_v56 = vpack.c.bf16 %v571_v55, %v571_v55 }
 0x344   :  { %1572 = vmatmul.mubr.msk.bf16.vlgmr.msra.gmra.mrb[16].mxu1 %vm86_vm2, %v574_v56  ;;  %1580 = vmatmul.mubr.msk.bf16.vlgmr.msra.gmra.mrb[20].mxu0 %vm86_vm2, %v574_v56 }
 0x345   :  { %1584 = vmatpush3.bf16.msra.mxu1 %v1971_v7  ;;  %1587 = vmatprep.mubr.msk.bf16.mxu1 %vm1886_vm0, %v1885_v0 }
 0x346   :  { %1585 = vmatprep.subr.bf16.mxu1 %v1885_v0  ;;  %1592 = vmatpush3.bf16.msra.mxu0 %v1952_v1 }
 0x347   :  { %1593 = vmatprep.subr.bf16.mxu0 %v1885_v0  ;;  %1595 = vmatprep.mubr.msk.bf16.mxu0 %vm1886_vm0, %v1885_v0 }
 0x349   :  { %1586 = vmatpush3.bf16.msra.mxu1 %v1977_v9 }
 0x34a   :  { %1599 = vmatprep.subr.bf16.mxu1 %v1885_v0  ;;  %1594 = vmatpush3.bf16.msra.mxu0 %v1954_v2 }
 0x34b   :  { %1607 = vmatprep.subr.bf16.mxu0 %v1885_v0 }
 0x34c   :  { %1588 = vmatmul.mubr.msk.bf16.vlgmr.msra.gmra.mrb[20].mxu1 %vm86_vm2, %v574_v56 }
 0x34d   :  { %1600 = vmatpush3.bf16.msra.mxu1 %v1962_v4  ;;  %1603 = vmatprep.mubr.msk.bf16.mxu1 %vm1886_vm0, %v1885_v0 }
 0x34e   :  { %1601 = vmatprep.subr.bf16.mxu1 %v1885_v0 }
 0x351   :  { %1602 = vmatpush3.bf16.msra.mxu1 %v1965_v5 }
 0x352   :  { %1615 = vmatprep.subr.bf16.mxu1 %v1885_v0 }
 0x417   :  { %v612_v58 = vpop.f32.mrb[16].mxu1  ;;  %v652_v59 = vpop.f32.mrb[20].mxu0 }
 0x418   :  { %v660_v60 = vadd.f32 %v659_v57, %v612_v58  ;;  %v1573_v62 = vpop.f32.mrb[17].mxu1  ;;  %v1581_v63 = vpop.f32.mrb[21].mxu0  ;;  %v669_v12 = vadd.f32 %v668_v61, %v652_v59  ;;  %v830_v59 = vld [vmem:[#allocation3 + $0x1c] sm:$0x3] }
 0x419   :  { %v615_v3 = vpop.f32.mrb[18].mxu1  ;;  %v655_v6 = vpop.f32.mrb[22].mxu0 }
 0x41a   :  { %v1400_v8 = vmul.f32 -1.442695, %v660_v60  ;;  %v1574_v10 = vpop.f32.mrb[19].mxu1  ;;  %v1582_v11 = vpop.f32.mrb[23].mxu0  ;;  %v1401_v13 = vmul.f32 -1.442695, %v669_v12 }
 0x41b   :  { %v965_v12 = vld [vmem:[#allocation3 + $0x1e] sm:$0x3] }
 0x41c   :  { %1733 = vpow2.f32 %v1400_v8 }
 0x41d   :  { %1735 = vpow2.f32 %v1401_v13 }
 0x41f   :  { %v712_v14 = vpop.f32.mrb[20].mxu1 }
 0x420   :  { %v1589_v15 = vpop.f32.mrb[21].mxu1  ;;  %v713_v22 = vadd.f32 %v2000_v31, %v712_v14 }
 0x421   :  { %v715_v16 = vpop.f32.mrb[22].mxu1 }
 0x422   :  { %v1590_v17 = vpop.f32.mrb[23].mxu1  ;;  %v974_v16 = vld [vmem:[#allocation3 + $0x20] sm:$0x3] }
 0x426   :  { %v1734_v18 = vpop.eup %1733 }
 0x427   :  { %v664_v19 = vadd.f32 1.0, %v1734_v18  ;;  %v1736_v20 = vpop.eup %1735 }
 0x428   :  { %v673_v21 = vadd.f32 1.0, %v1736_v20 }
 0x429   :  { %1737 = vrcp.f32 %v664_v19 }
 0x42a   :  { %1739 = vrcp.f32 %v673_v21 }
 0x433   :  { %v1738_v23 = vpop.eup %1737 }
 0x434   :  { %v718_v25 = vmul.f32 %v1738_v23, %v713_v22  ;;  %v1740_v27 = vpop.eup %1739 }
 0x435   :  { %v721_v28 = vsub.f32 1.0, %v1740_v27  ;;  %v723_v30 = vmul.f32 %v1740_v27, %v571_v55 }
 0x436   :  { %v719_v26 = vadd.f32 %v718_v25, %v677_v24 }
 0x438   :  { %1741 = vtanh.f32 %v719_v26 }
 0x442   :  { %v1742_v29 = vpop.eup %1741 }
 0x443   :  { %v722_v32 = vmul.f32 %v1742_v29, %v721_v28 }
 0x445   :  { %v724_v33 = vadd.f32 %v723_v30, %v722_v32 }
 0x447   :  { %726 = vst.msk [vmem:[#allocation8 + $0x6] sm:$0x3] %vm55_vm1, %v724_v33  ;;  %v727_v34 = vpack.c.bf16 %v724_v33, %v724_v33 }
 0x449   :  { %1596 = vmatmul.mubr.msk.bf16.vlgmr.msra.gmra.mrb[24].mxu0 %vm86_vm2, %v727_v34  ;;  %1604 = vmatmul.mubr.msk.bf16.vlgmr.msra.gmra.mrb[24].mxu1 %vm86_vm2, %v727_v34 }
 0x44a   :  { %1608 = vmatpush3.bf16.msra.mxu0 %v1971_v7  ;;  %1611 = vmatprep.mubr.msk.bf16.mxu0 %vm1886_vm0, %v1885_v0 }
 0x44b   :  { %1609 = vmatprep.subr.bf16.mxu0 %v1885_v0  ;;  %1616 = vmatpush3.bf16.msra.mxu1 %v1952_v1 }
 0x44c   :  { %1617 = vmatprep.subr.bf16.mxu1 %v1885_v0  ;;  %1619 = vmatprep.mubr.msk.bf16.mxu1 %vm1886_vm0, %v1885_v0 }
 0x44e   :  { %1610 = vmatpush3.bf16.msra.mxu0 %v1977_v9 }
 0x44f   :  { %1623 = vmatprep.subr.bf16.mxu0 %v1885_v0  ;;  %1618 = vmatpush3.bf16.msra.mxu1 %v1954_v2 }
 0x450   :  { %1631 = vmatprep.subr.bf16.mxu1 %v1885_v0 }
 0x451   :  { %1612 = vmatmul.mubr.msk.bf16.vlgmr.msra.gmra.mrb[28].mxu0 %vm86_vm2, %v727_v34 }
 0x452   :  { %1624 = vmatpush3.bf16.msra.mxu0 %v1962_v4  ;;  %1627 = vmatprep.mubr.msk.bf16.mxu0 %vm1886_vm0, %v1885_v0 }
 0x453   :  { %1625 = vmatprep.subr.bf16.mxu0 %v1885_v0 }
 0x456   :  { %1626 = vmatpush3.bf16.msra.mxu0 %v1965_v5 }
 0x457   :  { %1639 = vmatprep.subr.bf16.mxu0 %v1885_v0 }
 0x51c   :  { %v765_v36 = vpop.f32.mrb[24].mxu0  ;;  %v805_v37 = vpop.f32.mrb[24].mxu1 }
 0x51d   :  { %v813_v38 = vadd.f32 %v812_v35, %v765_v36  ;;  %v1597_v40 = vpop.f32.mrb[25].mxu0  ;;  %v1605_v41 = vpop.f32.mrb[25].mxu1  ;;  %v822_v47 = vadd.f32 %v821_v39, %v805_v37  ;;  %v983_v37 = vld [vmem:[#allocation3 + $0x22] sm:$0x3] }
 0x51e   :  { %v768_v42 = vpop.f32.mrb[26].mxu0  ;;  %v808_v43 = vpop.f32.mrb[26].mxu1 }
 0x51f   :  { %v1405_v44 = vmul.f32 -1.442695, %v813_v38  ;;  %v1598_v45 = vpop.f32.mrb[27].mxu0  ;;  %v1606_v46 = vpop.f32.mrb[27].mxu1  ;;  %v1406_v48 = vmul.f32 -1.442695, %v822_v47 }
 0x521   :  { %1743 = vpow2.f32 %v1405_v44 }
 0x522   :  { %1745 = vpow2.f32 %v1406_v48 }
 0x524   :  { %v865_v49 = vpop.f32.mrb[28].mxu0 }
 0x525   :  { %v1613_v50 = vpop.f32.mrb[29].mxu0  ;;  %v866_v57 = vadd.f32 %v2000_v31, %v865_v49 }
 0x526   :  { %v868_v51 = vpop.f32.mrb[30].mxu0  ;;  %v1127_v50 = vld [vmem:[#allocation3 + $0x26] sm:$0x3] }
 0x527   :  { %v1614_v52 = vpop.f32.mrb[31].mxu0 }
 0x52b   :  { %v1744_v53 = vpop.eup %1743 }
 0x52c   :  { %v817_v54 = vadd.f32 1.0, %v1744_v53  ;;  %v1746_v55 = vpop.eup %1745 }
 0x52d   :  { %v826_v56 = vadd.f32 1.0, %v1746_v55 }
 0x52e   :  { %1747 = vrcp.f32 %v817_v54 }
 0x52f   :  { %1749 = vrcp.f32 %v826_v56 }
 0x538   :  { %v1748_v58 = vpop.eup %1747 }
 0x539   :  { %v871_v60 = vmul.f32 %v1748_v58, %v866_v57  ;;  %v1750_v62 = vpop.eup %1749 }
 0x53a   :  { %v874_v63 = vsub.f32 1.0, %v1750_v62  ;;  %v876_v6 = vmul.f32 %v1750_v62, %v724_v33 }
 0x53b   :  { %v872_v61 = vadd.f32 %v871_v60, %v830_v59 }
 0x53d   :  { %1751 = vtanh.f32 %v872_v61 }
 0x547   :  { %v1752_v3 = vpop.eup %1751 }
 0x548   :  { %v875_v8 = vmul.f32 %v1752_v3, %v874_v63 }
 0x54a   :  { %v877_v10 = vadd.f32 %v876_v6, %v875_v8 }
 0x54c   :  { %879 = vst.msk [vmem:[#allocation8 + $0x8] sm:$0x3] %vm55_vm1, %v877_v10  ;;  %v880_v11 = vpack.c.bf16 %v877_v10, %v877_v10 }
 0x54e   :  { %1620 = vmatmul.mubr.msk.bf16.vlgmr.msra.gmra.mrb[28].mxu1 %vm86_vm2, %v880_v11  ;;  %1628 = vmatmul.mubr.msk.bf16.vlgmr.msra.gmra.mrb[32].mxu0 %vm86_vm2, %v880_v11 }
 0x54f   :  { %1632 = vmatpush3.bf16.msra.mxu1 %v1971_v7  ;;  %1635 = vmatprep.mubr.msk.bf16.mxu1 %vm1886_vm0, %v1885_v0 }
 0x550   :  { %1633 = vmatprep.subr.bf16.mxu1 %v1885_v0  ;;  %1640 = vmatpush3.bf16.msra.mxu0 %v1952_v1 }
 0x551   :  { %1641 = vmatprep.subr.bf16.mxu0 %v1885_v0  ;;  %1643 = vmatprep.mubr.msk.bf16.mxu0 %vm1886_vm0, %v1885_v0 }
 0x553   :  { %1634 = vmatpush3.bf16.msra.mxu1 %v1977_v9 }
 0x554   :  { %1647 = vmatprep.subr.bf16.mxu1 %v1885_v0  ;;  %1642 = vmatpush3.bf16.msra.mxu0 %v1954_v2 }
 0x555   :  { %1655 = vmatprep.subr.bf16.mxu0 %v1885_v0 }
 0x556   :  { %1636 = vmatmul.mubr.msk.bf16.vlgmr.msra.gmra.mrb[32].mxu1 %vm86_vm2, %v880_v11 }
 0x557   :  { %1648 = vmatpush3.bf16.msra.mxu1 %v1962_v4  ;;  %1651 = vmatprep.mubr.msk.bf16.mxu1 %vm1886_vm0, %v1885_v0 }
 0x558   :  { %1649 = vmatprep.subr.bf16.mxu1 %v1885_v0 }
 0x55b   :  { %1650 = vmatpush3.bf16.msra.mxu1 %v1965_v5 }
 0x55c   :  { %1663 = vmatprep.subr.bf16.mxu1 %v1885_v0 }
 0x621   :  { %v918_v13 = vpop.f32.mrb[28].mxu1  ;;  %v958_v14 = vpop.f32.mrb[32].mxu0 }
 0x622   :  { %v966_v15 = vadd.f32 %v965_v12, %v918_v13  ;;  %v1621_v17 = vpop.f32.mrb[29].mxu1  ;;  %v1629_v18 = vpop.f32.mrb[33].mxu0  ;;  %v975_v24 = vadd.f32 %v974_v16, %v958_v14 }
 0x623   :  { %v921_v19 = vpop.f32.mrb[30].mxu1  ;;  %v961_v20 = vpop.f32.mrb[34].mxu0 }
 0x624   :  { %v1410_v21 = vmul.f32 -1.442695, %v966_v15  ;;  %v1622_v22 = vpop.f32.mrb[31].mxu1  ;;  %v1630_v23 = vpop.f32.mrb[35].mxu0  ;;  %v1411_v25 = vmul.f32 -1.442695, %v975_v24 }
 0x625   :  { %v1271_v20 = vld [vmem:[#allocation3 + $0x2a] sm:$0x3]  ;;  %v1280_v24 = vld [vmem:[#allocation3 + $0x2c] sm:$0x3] }
 0x626   :  { %1753 = vpow2.f32 %v1410_v21 }
 0x627   :  { %1755 = vpow2.f32 %v1411_v25 }
 0x629   :  { %v1018_v26 = vpop.f32.mrb[32].mxu1 }
 0x62a   :  { %v1637_v27 = vpop.f32.mrb[33].mxu1  ;;  %v1019_v35 = vadd.f32 %v2000_v31, %v1018_v26 }
 0x62b   :  { %v1021_v28 = vpop.f32.mrb[34].mxu1 }
 0x62c   :  { %v1638_v29 = vpop.f32.mrb[35].mxu1 }
 0x630   :  { %v1754_v30 = vpop.eup %1753 }
 0x631   :  { %v970_v32 = vadd.f32 1.0, %v1754_v30  ;;  %v1756_v33 = vpop.eup %1755 }
 0x632   :  { %v979_v34 = vadd.f32 1.0, %v1756_v33 }
 0x633   :  { %1757 = vrcp.f32 %v970_v32 }
 0x634   :  { %1759 = vrcp.f32 %v979_v34 }
 0x63d   :  { %v1758_v36 = vpop.eup %1757 }
 0x63e   :  { %v1024_v38 = vmul.f32 %v1758_v36, %v1019_v35  ;;  %v1760_v40 = vpop.eup %1759 }
 0x63f   :  { %v1027_v41 = vsub.f32 1.0, %v1760_v40  ;;  %v1029_v43 = vmul.f32 %v1760_v40, %v877_v10  ;;  %v1136_v10 = vld [vmem:[#allocation3 + $0x28] sm:$0x3] }
 0x640   :  { %v1025_v39 = vadd.f32 %v1024_v38, %v983_v37 }
 0x642   :  { %1761 = vtanh.f32 %v1025_v39 }
 0x64c   :  { %v1762_v42 = vpop.eup %1761 }
 0x64d   :  { %v1028_v44 = vmul.f32 %v1762_v42, %v1027_v41  ;;  %v1289_v42 = vld [vmem:[#allocation3 + $0x2e] sm:$0x3] }
 0x64f   :  { %v1030_v45 = vadd.f32 %v1029_v43, %v1028_v44 }
 0x651   :  { %1032 = vst.msk [vmem:[#allocation8 + $0xa] sm:$0x3] %vm55_vm1, %v1030_v45  ;;  %v1033_v46 = vpack.c.bf16 %v1030_v45, %v1030_v45 }
 0x653   :  { %1644 = vmatmul.mubr.msk.bf16.vlgmr.msra.gmra.mrb[36].mxu0 %vm86_vm2, %v1033_v46  ;;  %1652 = vmatmul.mubr.msk.bf16.vlgmr.msra.gmra.mrb[36].mxu1 %vm86_vm2, %v1033_v46 }
 0x654   :  { %1656 = vmatpush3.bf16.msra.mxu0 %v1971_v7  ;;  %1659 = vmatprep.mubr.msk.bf16.mxu0 %vm1886_vm0, %v1885_v0 }
 0x655   :  { %1657 = vmatprep.subr.bf16.mxu0 %v1885_v0  ;;  %1664 = vmatpush3.bf16.msra.mxu1 %v1952_v1  ;;  %v1118_v1 = vld [vmem:[#allocation3 + $0x24] sm:$0x3] }
 0x656   :  { %1665 = vmatprep.subr.bf16.mxu1 %v1885_v0  ;;  %1667 = vmatprep.mubr.msk.bf16.mxu1 %vm1886_vm0, %v1885_v0 }
 0x658   :  { %1658 = vmatpush3.bf16.msra.mxu0 %v1977_v9 }
 0x659   :  { %1671 = vmatprep.subr.bf16.mxu0 %v1885_v0  ;;  %1666 = vmatpush3.bf16.msra.mxu1 %v1954_v2 }
 0x65a   :  { %1679 = vmatprep.subr.bf16.mxu1 %v1885_v0 }
 0x65b   :  { %1660 = vmatmul.mubr.msk.bf16.vlgmr.msra.gmra.mrb[40].mxu0 %vm86_vm2, %v1033_v46 }
 0x65c   :  { %1672 = vmatpush3.bf16.msra.mxu0 %v1962_v4  ;;  %1675 = vmatprep.mubr.msk.bf16.mxu0 %vm1886_vm0, %v1885_v0 }
 0x65d   :  { %1673 = vmatprep.subr.bf16.mxu0 %v1885_v0 }
 0x660   :  { %1674 = vmatpush3.bf16.msra.mxu0 %v1965_v5 }
 0x726   :  { %v1071_v47 = vpop.f32.mrb[36].mxu0  ;;  %v1111_v48 = vpop.f32.mrb[36].mxu1 }
 0x727   :  { %v1119_v49 = vadd.f32 %v1118_v1, %v1071_v47  ;;  %v1645_v51 = vpop.f32.mrb[37].mxu0  ;;  %v1653_v2 = vpop.f32.mrb[37].mxu1  ;;  %v1128_v4 = vadd.f32 %v1127_v50, %v1111_v48 }
 0x728   :  { %v1074_v52 = vpop.f32.mrb[38].mxu0  ;;  %v1114_v53 = vpop.f32.mrb[38].mxu1 }
 0x729   :  { %v1415_v54 = vmul.f32 -1.442695, %v1119_v49  ;;  %v1646_v55 = vpop.f32.mrb[39].mxu0  ;;  %v1654_v56 = vpop.f32.mrb[39].mxu1  ;;  %v1416_v57 = vmul.f32 -1.442695, %v1128_v4 }
 0x72b   :  { %1763 = vpow2.f32 %v1415_v54 }
 0x72c   :  { %1765 = vpow2.f32 %v1416_v57 }
 0x72e   :  { %v1171_v58 = vpop.f32.mrb[40].mxu0 }
 0x72f   :  { %v1661_v59 = vpop.f32.mrb[41].mxu0  ;;  %v1172_v6 = vadd.f32 %v2000_v31, %v1171_v58 }
 0x730   :  { %v1174_v60 = vpop.f32.mrb[42].mxu0 }
 0x731   :  { %v1662_v61 = vpop.f32.mrb[43].mxu0 }
 0x735   :  { %v1764_v5 = vpop.eup %1763 }
 0x736   :  { %v1123_v62 = vadd.f32 1.0, %v1764_v5  ;;  %v1766_v63 = vpop.eup %1765 }
 0x737   :  { %v1132_v3 = vadd.f32 1.0, %v1766_v63 }
 0x738   :  { %1767 = vrcp.f32 %v1123_v62 }
 0x739   :  { %1769 = vrcp.f32 %v1132_v3 }
 0x742   :  { %v1768_v8 = vpop.eup %1767 }
 0x743   :  { %v1177_v11 = vmul.f32 %v1768_v8, %v1172_v6  ;;  %v1770_v13 = vpop.eup %1769 }
 0x744   :  { %v1180_v14 = vsub.f32 1.0, %v1770_v13  ;;  %v1182_v16 = vmul.f32 %v1770_v13, %v1030_v45 }
 0x745   :  { %v1178_v12 = vadd.f32 %v1177_v11, %v1136_v10 }
 0x747   :  { %1771 = vtanh.f32 %v1178_v12 }
 0x751   :  { %v1772_v15 = vpop.eup %1771 }
 0x752   :  { %v1181_v17 = vmul.f32 %v1772_v15, %v1180_v14 }
 0x754   :  { %v1183_v18 = vadd.f32 %v1182_v16, %v1181_v17 }
 0x756   :  { %1185 = vst.msk [vmem:[#allocation8 + $0xc] sm:$0x3] %vm55_vm1, %v1183_v18  ;;  %v1186_v19 = vpack.c.bf16 %v1183_v18, %v1183_v18 }
 0x758   :  { %1668 = vmatmul.mubr.msk.bf16.vlgmr.msra.gmra.mrb[40].mxu1 %vm86_vm2, %v1186_v19  ;;  %1676 = vmatmul.mubr.msk.bf16.vlgmr.msra.gmra.mrb[44].mxu0 %vm86_vm2, %v1186_v19 }
 0x759   :  { %1680 = vmatpush3.bf16.msra.mxu1 %v1971_v7  ;;  %1683 = vmatprep.mubr.msk.bf16.mxu1 %vm1886_vm0, %v1885_v0 }
 0x75a   :  { %1681 = vmatprep.subr.bf16.mxu1 %v1885_v0 }
 0x75d   :  { %1682 = vmatpush3.bf16.msra.mxu1 %v1977_v9 }
 0x760   :  { %1684 = vmatmul.mubr.msk.bf16.vlgmr.msra.gmra.mrb[44].mxu1 %vm86_vm2, %v1186_v19 }
 0x82b   :  { %v1224_v21 = vpop.f32.mrb[40].mxu1  ;;  %v1264_v22 = vpop.f32.mrb[44].mxu0 }
 0x82c   :  { %v1272_v23 = vadd.f32 %v1271_v20, %v1224_v21  ;;  %v1669_v25 = vpop.f32.mrb[41].mxu1  ;;  %v1677_v26 = vpop.f32.mrb[45].mxu0  ;;  %v1281_v32 = vadd.f32 %v1280_v24, %v1264_v22 }
 0x82d   :  { %v1227_v27 = vpop.f32.mrb[42].mxu1  ;;  %v1267_v28 = vpop.f32.mrb[46].mxu0 }
 0x82e   :  { %v1420_v29 = vmul.f32 -1.442695, %v1272_v23  ;;  %v1670_v7 = vpop.f32.mrb[43].mxu1  ;;  %v1678_v30 = vpop.f32.mrb[47].mxu0  ;;  %v1421_v33 = vmul.f32 -1.442695, %v1281_v32 }
 0x830   :  { %1773 = vpow2.f32 %v1420_v29 }
 0x831   :  { %1775 = vpow2.f32 %v1421_v33 }
 0x833   :  { %v1324_v0 = vpop.f32.mrb[44].mxu1 }
 0x834   :  { %v1685_v34 = vpop.f32.mrb[45].mxu1  ;;  %v1325_v40 = vadd.f32 %v2000_v31, %v1324_v0 }
 0x835   :  { %v1327_v9 = vpop.f32.mrb[46].mxu1 }
 0x836   :  { %v1686_v35 = vpop.f32.mrb[47].mxu1 }
 0x83a   :  { %v1774_v36 = vpop.eup %1773 }
 0x83b   :  { %v1276_v37 = vadd.f32 1.0, %v1774_v36  ;;  %v1776_v38 = vpop.eup %1775 }
 0x83c   :  { %v1285_v39 = vadd.f32 1.0, %v1776_v38 }
 0x83d   :  { %1777 = vrcp.f32 %v1276_v37 }
 0x83e   :  { %1779 = vrcp.f32 %v1285_v39 }
 0x847   :  { %v1778_v41 = vpop.eup %1777 }
 0x848   :  { %v1330_v43 = vmul.f32 %v1778_v41, %v1325_v40  ;;  %v1780_v45 = vpop.eup %1779 }
 0x849   :  { %v1333_v46 = vsub.f32 1.0, %v1780_v45  ;;  %v1335_v47 = vmul.f32 %v1780_v45, %v1183_v18 }
 0x84a   :  { %v1331_v44 = vadd.f32 %v1330_v43, %v1289_v42 }
 0x84c   :  { %1781 = vtanh.f32 %v1331_v44 }
 0x856   :  { %v1782_v1 = vpop.eup %1781 }
 0x857   :  { %v1334_v48 = vmul.f32 %v1782_v1, %v1333_v46 }
 0x859   :  { %v1336_v49 = vadd.f32 %v1335_v47, %v1334_v48 }
 0x85b   :  { %1338 = vst.msk [vmem:[#allocation8 + $0xe] sm:$0x3] %vm55_vm1, %v1336_v49  ;;  %1339 = vst.msk [vmem:[#allocation2] sm:$0x3] %vm55_vm1, %v1336_v49 }
 0x85c   :  { %1343 = vst.msk [vmem:[#allocation9] sm:$0x3] %vm55_vm1, %v1336_v49 }
 0x85d   :  { %1838 = shalt.err (!%p1835_p6)
}
 0x85e   :  { %s1839_s30 = scalar_lea.hbm %s2191_s4, 256 }
 0x85f   :  { %p1840_p7 = scmp.ne.s32.totalorder %s2191_s4, %s1839_s30  ;;  %p1843_p8 = scmp.lt.u32.totalorder %s1839_s30, %s2191_s4 }
 0x861   :  { %p1845_p9 = pnand %p1843_p8, %p1840_p7 }
 0x863   :  { %1848 = shalt.err (!%p1845_p9)
}
 0x864   :  { %1355 = dma.vmem_to_hbm [thread:$0]  %s1350_s22, 256, %s2191_s4, [#allocation5], %s1880_s28, %s1880_s28, %s1881_s29  }
 0x865   :  { %s1849_s12 = scalar_lea.vmem %s2150_s24, 32  ;;  %p1854_p11 = scmp.lt.s32.totalorder %s2150_s24, %s2150_s24 }
 0x866   :  { %p1850_p10 = scmp.ne.s32.totalorder %s2150_s24, %s1849_s12  ;;  %p1855_p12 = scmp.lt.s32.totalorder %s1849_s12, %s1849_s12 }
 0x868   :  { %p1856_p13 = por %p1855_p12, %p1854_p11 }
 0x86a   :  { %p1857_p0 = pnand %p1856_p13, %p1850_p10 }
 0x86c   :  { %1860 = shalt.err (!%p1857_p0)
}
 0x86d   :  { %s1861_s15 = scalar_lea.hbm %s2192_s5, 32 }
 0x86e   :  { %p1862_p1 = scmp.ne.s32.totalorder %s2192_s5, %s1861_s15  ;;  %p1865_p2 = scmp.lt.u32.totalorder %s1861_s15, %s2192_s5 }
 0x870   :  { %p1867_p3 = pnand %p1865_p2, %p1862_p1 }
 0x872   :  { %1870 = shalt.err (!%p1867_p3)
}
 0x873   :  { %1365 = dma.vmem_to_hbm [thread:$0]  %s2150_s24, 32, %s2192_s5, [#allocation10]  }
 0x874   :  { %1875 = dma.done.wait [#allocation5], 256  }
 0x875   :  { %1876 = vsyncadd [#allocation5], 4294967040 }
 0x876   :  { %1877 = dma.done.wait [#allocation10], 32  }
 0x877   :  { %1878 = vsyncadd [#allocation10], 4294967264 }
 0x878   :  { %1372 = vsyncpa [#allocation4], 1 }
 0x879   :  { %1373 = vsyncpa [#allocation7], 1 }
 0x87a   :  { %1374 = vsyncpa [#allocation5], 1 }
 0x87b   :  { %1375 = vsyncpa [#allocation10], 1 }

</bundles_post_ra>
